<compile_context>
chip_gen: v6e
topology: v6e:2x2x1
jax: 0.10.0
libtpu: 0.0.40
codegen_flags: <defaults>
</compile_context>

<pallas_src>
import functools

import jax
import jax.numpy as jnp
from jax import lax
from jax.experimental import pallas as pl
from jax.experimental.pallas import tpu as pltpu


def _round_up(x, m):
    return (x + m - 1) // m * m


def _condwcon_kernel(x_ref, dww_ref, s1_ref, b1_ref, pw_ref, s2_ref, b2_ref,
                     out_ref, xpad_ref, *, H, W, TH, C_in_p, C_out_p):
    """Grid = (batch, H // TH).  One TH-row output strip per step.

    x_ref    : (1, H, W, C_in_p)    bf16  full image of the current batch elem
    dww_ref  : (9, C_in_p)          f32   depthwise taps, row k = tap (k//3, k%3)
    s1_ref   : (1, C_in_p)          f32   folded BN1 scale
    b1_ref   : (1, C_in_p)          f32   folded BN1 bias (incl. dw bias)
    pw_ref   : (C_in_p, C_out_p)    bf16  1x1 (pointwise) weight
    s2_ref   : (1, C_out_p)         f32   folded BN2 scale
    b2_ref   : (1, C_out_p)         f32   folded BN2 bias (incl. pw bias)
    out_ref  : (1, TH, W, C_out_p)  bf16  output row strip (lane-dense)
    xpad_ref : (H+2, W+2, C_in_p)   f32   VMEM scratch: zero-padded image
    """
    s = pl.program_id(1)

    # Build the zero-padded image once per batch element (no HBM pad pass).
    @pl.when(s == 0)
    def _():
        xpad_ref[...] = jnp.zeros_like(xpad_ref)
        xpad_ref[1:H + 1, 1:W + 1, :] = x_ref[0].astype(jnp.float32)

    h0 = pl.multiple_of(s * TH, TH)          # first output row of this strip

    # --- depthwise 3x3, stride 1: shifted windows read straight from VMEM ---
    acc = jnp.zeros((TH, W, C_in_p), jnp.float32)
    for dy in range(3):
        for dx in range(3):
            patch = xpad_ref[pl.ds(h0 + dy, TH), dx:dx + W, :]
            acc = acc + patch * dww_ref[dy * 3 + dx, :][None, None, :]

    # --- folded BN1 + ReLU ---
    y = jnp.maximum(acc * s1_ref[0][None, None, :] + b1_ref[0][None, None, :],
                    0.0)

    # --- 1x1 conv on the MXU: (TH*W, C_in_p) @ (C_in_p, C_out_p) ---
    y2 = jnp.dot(y.reshape(TH * W, C_in_p).astype(jnp.bfloat16),
                 pw_ref[...],
                 preferred_element_type=jnp.float32)

    # --- folded BN2 + ReLU ---
    y2 = jnp.maximum(y2 * s2_ref[0][None, :] + b2_ref[0][None, :], 0.0)

    out_ref[0] = y2.reshape(TH, W, C_out_p).astype(out_ref.dtype)


def condwcon_forward(x_nchw, params, stride=1, eps=1e-5):
    """Pallas forward for the condwcon module (stride=1, BN in eval mode)."""
    assert stride == 1, "kernel implements the module's default stride=1"
    (dw_w, dw_b, g1, be1, m1, v1, pw_w, pw_b, g2, be2, m2, v2) = params

    N, C_in, H, W = x_nchw.shape
    C_out = pw_w.shape[0]
    C_in_p = _round_up(C_in, 128)      # lane-dense channel padding
    C_out_p = _round_up(C_out, 128)

    TH = 8 if H % 8 == 0 else H        # output row-strip height
    S = H // TH

    # NCHW -> NHWC, bf16 activations, channels padded to the 128-lane width.
    x_nhwc = jnp.transpose(x_nchw, (0, 2, 3, 1)).astype(jnp.bfloat16)
    x_nhwc = jnp.pad(x_nhwc, ((0, 0), (0, 0), (0, 0), (0, C_in_p - C_in)))

    # Depthwise weight (C_in, 1, 3, 3) -> (9, C_in_p), f32 (tiny).
    dww = jnp.transpose(dw_w[:, 0, :, :], (1, 2, 0)).reshape(9, C_in)
    dww = jnp.pad(dww, ((0, 0), (0, C_in_p - C_in))).astype(jnp.float32)
    # Pointwise weight (C_out, C_in, 1, 1) -> (C_in_p, C_out_p), bf16.
    pww = jnp.transpose(pw_w[:, :, 0, 0], (1, 0))
    pww = jnp.pad(pww, ((0, C_in_p - C_in),
                        (0, C_out_p - C_out))).astype(jnp.bfloat16)

    # Fold BN (inference mode) and the conv biases into per-channel scale/bias.
    s1 = g1 / jnp.sqrt(v1 + eps)
    b1 = be1 + s1 * (dw_b - m1)
    s2 = g2 / jnp.sqrt(v2 + eps)
    b2 = be2 + s2 * (pw_b - m2)
    s1 = jnp.pad(s1, (0, C_in_p - C_in)).reshape(1, C_in_p).astype(jnp.float32)
    b1 = jnp.pad(b1, (0, C_in_p - C_in)).reshape(1, C_in_p).astype(jnp.float32)
    s2 = jnp.pad(s2, (0, C_out_p - C_out)).reshape(1, C_out_p).astype(jnp.float32)
    b2 = jnp.pad(b2, (0, C_out_p - C_out)).reshape(1, C_out_p).astype(jnp.float32)

    kernel = functools.partial(_condwcon_kernel, H=H, W=W, TH=TH,
                               C_in_p=C_in_p, C_out_p=C_out_p)

    flops = 2 * N * H * W * C_in_p * C_out_p + 2 * 9 * N * H * W * C_in_p
    bytes_accessed = (x_nhwc.size * 2 + pww.size * 2 + dww.size * 4
                      + (s1.size + b1.size + s2.size + b2.size) * 4
                      + N * H * W * C_out_p * 2)

    out_nhwc = pl.pallas_call(
        kernel,
        out_shape=jax.ShapeDtypeStruct((N, H, W, C_out_p), jnp.bfloat16),
        grid_spec=pltpu.PrefetchScalarGridSpec(
            num_scalar_prefetch=0,
            grid=(N, S),
            in_specs=[
                pl.BlockSpec((1, H, W, C_in_p), lambda n, s: (n, 0, 0, 0)),
                pl.BlockSpec((9, C_in_p), lambda n, s: (0, 0)),
                pl.BlockSpec((1, C_in_p), lambda n, s: (0, 0)),
                pl.BlockSpec((1, C_in_p), lambda n, s: (0, 0)),
                pl.BlockSpec((C_in_p, C_out_p), lambda n, s: (0, 0)),
                pl.BlockSpec((1, C_out_p), lambda n, s: (0, 0)),
                pl.BlockSpec((1, C_out_p), lambda n, s: (0, 0)),
            ],
            out_specs=pl.BlockSpec((1, TH, W, C_out_p),
                                   lambda n, s: (n, s, 0, 0)),
            scratch_shapes=[pltpu.VMEM((H + 2, W + 2, C_in_p), jnp.float32)],
        ),
        compiler_params=pltpu.CompilerParams(
            dimension_semantics=("parallel", "arbitrary"),
            vmem_limit_bytes=32 * 1024 * 1024),
        cost_estimate=pl.CostEstimate(flops=flops, transcendentals=0,
                                      bytes_accessed=bytes_accessed),
    )(x_nhwc, dww, s1, b1, pww, s2, b2)

    # Strip channel padding, NHWC -> NCHW (PyTorch convention), back to f32.
    return jnp.transpose(out_nhwc[..., :C_out], (0, 3, 1, 2)).astype(jnp.float32)


def condwcon_reference(x_nchw, params, stride=1, eps=1e-5):
    """Plain-JAX reference matching PyTorch semantics (BN in eval mode)."""
    (dw_w, dw_b, g1, be1, m1, v1, pw_w, pw_b, g2, be2, m2, v2) = params
    C_in = x_nchw.shape[1]

    y = lax.conv_general_dilated(
        x_nchw, dw_w, (stride, stride), ((1, 1), (1, 1)),
        dimension_numbers=("NCHW", "OIHW", "NCHW"),
        feature_group_count=C_in)
    y = y + dw_b[None, :, None, None]
    y = (y - m1[None, :, None, None]) / jnp.sqrt(v1 + eps)[None, :, None, None] \
        * g1[None, :, None, None] + be1[None, :, None, None]
    y = jnp.maximum(y, 0.0)

    z = lax.conv_general_dilated(
        y, pw_w, (1, 1), ((0, 0), (0, 0)),
        dimension_numbers=("NCHW", "OIHW", "NCHW"))
    z = z + pw_b[None, :, None, None]
    z = (z - m2[None, :, None, None]) / jnp.sqrt(v2 + eps)[None, :, None, None] \
        * g2[None, :, None, None] + be2[None, :, None, None]
    return jnp.maximum(z, 0.0)


def init_params(key, inplane, outplane):
    ks = jax.random.split(key, 12)
    dw_w = jax.random.normal(ks[0], (inplane, 1, 3, 3), jnp.float32) * 0.2
    dw_b = jax.random.normal(ks[1], (inplane,), jnp.float32) * 0.1
    g1 = jax.random.uniform(ks[2], (inplane,), jnp.float32, 0.5, 1.5)
    be1 = jax.random.normal(ks[3], (inplane,), jnp.float32) * 0.1
    m1 = jax.random.normal(ks[4], (inplane,), jnp.float32) * 0.05
    v1 = jax.random.uniform(ks[5], (inplane,), jnp.float32, 0.5, 1.5)
    pw_w = jax.random.normal(ks[6], (outplane, inplane, 1, 1), jnp.float32) * 0.2
    pw_b = jax.random.normal(ks[7], (outplane,), jnp.float32) * 0.1
    g2 = jax.random.uniform(ks[8], (outplane,), jnp.float32, 0.5, 1.5)
    be2 = jax.random.normal(ks[9], (outplane,), jnp.float32) * 0.1
    m2 = jax.random.normal(ks[10], (outplane,), jnp.float32) * 0.05
    v2 = jax.random.uniform(ks[11], (outplane,), jnp.float32, 0.5, 1.5)
    return (dw_w, dw_b, g1, be1, m1, v1, pw_w, pw_b, g2, be2, m2, v2)


if __name__ == "__main__":
    key = jax.random.PRNGKey(0)
    N, C_in, C_out, H, W = 2, 8, 16, 16, 16

    kx, kp = jax.random.split(key)
    x = jax.random.normal(kx, (N, C_in, H, W), jnp.float32)
    params = init_params(kp, C_in, C_out)

    out = jax.block_until_ready(condwcon_forward(x, params))
    ref = jax.block_until_ready(condwcon_reference(x, params))

    assert out.shape == (N, C_out, H, W)
    err = float(jnp.max(jnp.abs(out - ref)))
    scale = float(jnp.max(jnp.abs(ref))) + 1e-6
    # bf16 activations/weights on the kernel path => bf16-level relative
    # tolerance against the f32 reference.
    assert err <= 5e-2 * scale, f"mismatch vs reference: abs {err}, rel {err / scale}"
    print("KERNEL_OK")
</pallas_src>

<mosaic_0001>
module attributes {stable_mosaic.version = 11 : i64} {
  func.func @_condwcon_kernel(%arg0: i32, %arg1: i32, %arg2: memref<1x16x16x128xbf16, #tpu.memory_space<vmem>>, %arg3: memref<9x128xf32, #tpu.memory_space<vmem>>, %arg4: memref<1x128xf32, #tpu.memory_space<vmem>>, %arg5: memref<1x128xf32, #tpu.memory_space<vmem>>, %arg6: memref<128x128xbf16, #tpu.memory_space<vmem>>, %arg7: memref<1x128xf32, #tpu.memory_space<vmem>>, %arg8: memref<1x128xf32, #tpu.memory_space<vmem>>, %arg9: memref<1x8x16x128xbf16, #tpu.memory_space<vmem>>, %arg10: memref<18x18x128xf32, #tpu.memory_space<vmem>>) attributes {dimension_semantics = [#tpu.dimension_semantics<parallel>, #tpu.dimension_semantics<arbitrary>], iteration_bounds = array<i64: 2, 2>, scalar_prefetch = 0 : i64, scratch_operands = 1 : i64, tpu.core_type = #tpu.core_type<tc>, window_params = [{transform_indices = @transform_0, window_bounds = array<i64: 1, 16, 16, 128>}, {pipeline_mode = #tpu.pipeline_mode<synchronous>, transform_indices = @transform_1, window_bounds = array<i64: 9, 128>}, {pipeline_mode = #tpu.pipeline_mode<synchronous>, transform_indices = @transform_2, window_bounds = array<i64: 1, 128>}, {pipeline_mode = #tpu.pipeline_mode<synchronous>, transform_indices = @transform_3, window_bounds = array<i64: 1, 128>}, {pipeline_mode = #tpu.pipeline_mode<synchronous>, transform_indices = @transform_4, window_bounds = array<i64: 128, 128>}, {pipeline_mode = #tpu.pipeline_mode<synchronous>, transform_indices = @transform_5, window_bounds = array<i64: 1, 128>}, {pipeline_mode = #tpu.pipeline_mode<synchronous>, transform_indices = @transform_6, window_bounds = array<i64: 1, 128>}, {transform_indices = @transform_7, window_bounds = array<i64: 1, 8, 16, 128>}]} {
    %c0_i32 = arith.constant 0 : i32
    %0 = arith.cmpi eq, %arg1, %c0_i32 : i32
    %1 = arith.extui %0 : i1 to i32
    %c0_i32_0 = arith.constant 0 : i32
    %2 = arith.cmpi ne, %1, %c0_i32_0 : i32
    scf.if %2 {
      %cst_52 = arith.constant 0.000000e+00 : f32
      %120 = vector.broadcast %cst_52 : f32 to vector<18x18x128xf32>
      %c0_53 = arith.constant 0 : index
      %c0_54 = arith.constant 0 : index
      %c0_55 = arith.constant 0 : index
      %121 = vector.load %arg10[%c0_53, %c0_54, %c0_55] : memref<18x18x128xf32, #tpu.memory_space<vmem>>, vector<18x18x128xf32>
      tpu.vector_store %arg10[%c0_53, %c0_54, %c0_55], %120 {strides = array<i32>} : memref<18x18x128xf32, #tpu.memory_space<vmem>>, vector<18x18x128xf32>,
      %c0_56 = arith.constant 0 : index
      %c0_57 = arith.constant 0 : index
      %c0_58 = arith.constant 0 : index
      %c0_59 = arith.constant 0 : index
      %122 = vector.load %arg2[%c0_56, %c0_57, %c0_58, %c0_59] : memref<1x16x16x128xbf16, #tpu.memory_space<vmem>>, vector<1x16x16x128xbf16>
      %123 = vector.shape_cast %122 : vector<1x16x16x128xbf16> to vector<16x16x128xbf16>
      %124 = arith.extf %123 : vector<16x16x128xbf16> to vector<16x16x128xf32>
      %c1_60 = arith.constant 1 : index
      %c1_61 = arith.constant 1 : index
      %c0_62 = arith.constant 0 : index
      %125 = vector.load %arg10[%c1_60, %c1_61, %c0_62] : memref<18x18x128xf32, #tpu.memory_space<vmem>>, vector<16x16x128xf32>
      tpu.vector_store %arg10[%c1_60, %c1_61, %c0_62], %124 {strides = array<i32>} : memref<18x18x128xf32, #tpu.memory_space<vmem>>, vector<16x16x128xf32>,
    } else {
    }
    %c8_i32 = arith.constant 8 : i32
    %3 = arith.muli %arg1, %c8_i32 : i32
    %4 = tpu.assume_multiple %3, 8 : i32
    %cst = arith.constant 0.000000e+00 : f32
    %5 = vector.broadcast %cst : f32 to vector<8x16x128xf32>
    %c0_i32_1 = arith.constant 0 : i32
    %6 = arith.addi %4, %c0_i32_1 : i32
    %7 = arith.index_cast %6 : i32 to index
    %c0 = arith.constant 0 : index
    %c0_2 = arith.constant 0 : index
    %8 = vector.load %arg10[%7, %c0, %c0_2] : memref<18x18x128xf32, #tpu.memory_space<vmem>>, vector<8x16x128xf32>
    %c0_3 = arith.constant 0 : index
    %c0_4 = arith.constant 0 : index
    %9 = vector.load %arg3[%c0_3, %c0_4] : memref<9x128xf32, #tpu.memory_space<vmem>>, vector<1x128xf32>
    %10 = vector.shape_cast %9 : vector<1x128xf32> to vector<128xf32>
    %11 = vector.shape_cast %10 : vector<128xf32> to vector<1x1x128xf32>
    %12 = vector.broadcast %11 : vector<1x1x128xf32> to vector<8x16x128xf32>
    %13 = arith.mulf %8, %12 : vector<8x16x128xf32>
    %14 = arith.addf %5, %13 : vector<8x16x128xf32>
    %c0_i32_5 = arith.constant 0 : i32
    %15 = arith.addi %4, %c0_i32_5 : i32
    %16 = arith.index_cast %15 : i32 to index
    %c1 = arith.constant 1 : index
    %c0_6 = arith.constant 0 : index
    %17 = vector.load %arg10[%16, %c1, %c0_6] : memref<18x18x128xf32, #tpu.memory_space<vmem>>, vector<8x16x128xf32>
    %c1_7 = arith.constant 1 : index
    %c0_8 = arith.constant 0 : index
    %18 = vector.load %arg3[%c1_7, %c0_8] : memref<9x128xf32, #tpu.memory_space<vmem>>, vector<1x128xf32>
    %19 = vector.shape_cast %18 : vector<1x128xf32> to vector<128xf32>
    %20 = vector.shape_cast %19 : vector<128xf32> to vector<1x1x128xf32>
    %21 = vector.broadcast %20 : vector<1x1x128xf32> to vector<8x16x128xf32>
    %22 = arith.mulf %17, %21 : vector<8x16x128xf32>
    %23 = arith.addf %14, %22 : vector<8x16x128xf32>
    %c0_i32_9 = arith.constant 0 : i32
    %24 = arith.addi %4, %c0_i32_9 : i32
    %25 = arith.index_cast %24 : i32 to index
    %c2 = arith.constant 2 : index
    %c0_10 = arith.constant 0 : index
    %26 = vector.load %arg10[%25, %c2, %c0_10] : memref<18x18x128xf32, #tpu.memory_space<vmem>>, vector<8x16x128xf32>
    %c2_11 = arith.constant 2 : index
    %c0_12 = arith.constant 0 : index
    %27 = vector.load %arg3[%c2_11, %c0_12] : memref<9x128xf32, #tpu.memory_space<vmem>>, vector<1x128xf32>
    %28 = vector.shape_cast %27 : vector<1x128xf32> to vector<128xf32>
    %29 = vector.shape_cast %28 : vector<128xf32> to vector<1x1x128xf32>
    %30 = vector.broadcast %29 : vector<1x1x128xf32> to vector<8x16x128xf32>
    %31 = arith.mulf %26, %30 : vector<8x16x128xf32>
    %32 = arith.addf %23, %31 : vector<8x16x128xf32>
    %c1_i32 = arith.constant 1 : i32
    %33 = arith.addi %4, %c1_i32 : i32
    %34 = arith.index_cast %33 : i32 to index
    %c0_13 = arith.constant 0 : index
    %c0_14 = arith.constant 0 : index
    %35 = vector.load %arg10[%34, %c0_13, %c0_14] : memref<18x18x128xf32, #tpu.memory_space<vmem>>, vector<8x16x128xf32>
    %c3 = arith.constant 3 : index
    %c0_15 = arith.constant 0 : index
    %36 = vector.load %arg3[%c3, %c0_15] : memref<9x128xf32, #tpu.memory_space<vmem>>, vector<1x128xf32>
    %37 = vector.shape_cast %36 : vector<1x128xf32> to vector<128xf32>
    %38 = vector.shape_cast %37 : vector<128xf32> to vector<1x1x128xf32>
    %39 = vector.broadcast %38 : vector<1x1x128xf32> to vector<8x16x128xf32>
    %40 = arith.mulf %35, %39 : vector<8x16x128xf32>
    %41 = arith.addf %32, %40 : vector<8x16x128xf32>
    %c1_i32_16 = arith.constant 1 : i32
    %42 = arith.addi %4, %c1_i32_16 : i32
    %43 = arith.index_cast %42 : i32 to index
    %c1_17 = arith.constant 1 : index
    %c0_18 = arith.constant 0 : index
    %44 = vector.load %arg10[%43, %c1_17, %c0_18] : memref<18x18x128xf32, #tpu.memory_space<vmem>>, vector<8x16x128xf32>
    %c4 = arith.constant 4 : index
    %c0_19 = arith.constant 0 : index
    %45 = vector.load %arg3[%c4, %c0_19] : memref<9x128xf32, #tpu.memory_space<vmem>>, vector<1x128xf32>
    %46 = vector.shape_cast %45 : vector<1x128xf32> to vector<128xf32>
    %47 = vector.shape_cast %46 : vector<128xf32> to vector<1x1x128xf32>
    %48 = vector.broadcast %47 : vector<1x1x128xf32> to vector<8x16x128xf32>
    %49 = arith.mulf %44, %48 : vector<8x16x128xf32>
    %50 = arith.addf %41, %49 : vector<8x16x128xf32>
    %c1_i32_20 = arith.constant 1 : i32
    %51 = arith.addi %4, %c1_i32_20 : i32
    %52 = arith.index_cast %51 : i32 to index
    %c2_21 = arith.constant 2 : index
    %c0_22 = arith.constant 0 : index
    %53 = vector.load %arg10[%52, %c2_21, %c0_22] : memref<18x18x128xf32, #tpu.memory_space<vmem>>, vector<8x16x128xf32>
    %c5 = arith.constant 5 : index
    %c0_23 = arith.constant 0 : index
    %54 = vector.load %arg3[%c5, %c0_23] : memref<9x128xf32, #tpu.memory_space<vmem>>, vector<1x128xf32>
    %55 = vector.shape_cast %54 : vector<1x128xf32> to vector<128xf32>
    %56 = vector.shape_cast %55 : vector<128xf32> to vector<1x1x128xf32>
    %57 = vector.broadcast %56 : vector<1x1x128xf32> to vector<8x16x128xf32>
    %58 = arith.mulf %53, %57 : vector<8x16x128xf32>
    %59 = arith.addf %50, %58 : vector<8x16x128xf32>
    %c2_i32 = arith.constant 2 : i32
    %60 = arith.addi %4, %c2_i32 : i32
    %61 = arith.index_cast %60 : i32 to index
    %c0_24 = arith.constant 0 : index
    %c0_25 = arith.constant 0 : index
    %62 = vector.load %arg10[%61, %c0_24, %c0_25] : memref<18x18x128xf32, #tpu.memory_space<vmem>>, vector<8x16x128xf32>
    %c6 = arith.constant 6 : index
    %c0_26 = arith.constant 0 : index
    %63 = vector.load %arg3[%c6, %c0_26] : memref<9x128xf32, #tpu.memory_space<vmem>>, vector<1x128xf32>
    %64 = vector.shape_cast %63 : vector<1x128xf32> to vector<128xf32>
    %65 = vector.shape_cast %64 : vector<128xf32> to vector<1x1x128xf32>
    %66 = vector.broadcast %65 : vector<1x1x128xf32> to vector<8x16x128xf32>
    %67 = arith.mulf %62, %66 : vector<8x16x128xf32>
    %68 = arith.addf %59, %67 : vector<8x16x128xf32>
    %c2_i32_27 = arith.constant 2 : i32
    %69 = arith.addi %4, %c2_i32_27 : i32
    %70 = arith.index_cast %69 : i32 to index
    %c1_28 = arith.constant 1 : index
    %c0_29 = arith.constant 0 : index
    %71 = vector.load %arg10[%70, %c1_28, %c0_29] : memref<18x18x128xf32, #tpu.memory_space<vmem>>, vector<8x16x128xf32>
    %c7 = arith.constant 7 : index
    %c0_30 = arith.constant 0 : index
    %72 = vector.load %arg3[%c7, %c0_30] : memref<9x128xf32, #tpu.memory_space<vmem>>, vector<1x128xf32>
    %73 = vector.shape_cast %72 : vector<1x128xf32> to vector<128xf32>
    %74 = vector.shape_cast %73 : vector<128xf32> to vector<1x1x128xf32>
    %75 = vector.broadcast %74 : vector<1x1x128xf32> to vector<8x16x128xf32>
    %76 = arith.mulf %71, %75 : vector<8x16x128xf32>
    %77 = arith.addf %68, %76 : vector<8x16x128xf32>
    %c2_i32_31 = arith.constant 2 : i32
    %78 = arith.addi %4, %c2_i32_31 : i32
    %79 = arith.index_cast %78 : i32 to index
    %c2_32 = arith.constant 2 : index
    %c0_33 = arith.constant 0 : index
    %80 = vector.load %arg10[%79, %c2_32, %c0_33] : memref<18x18x128xf32, #tpu.memory_space<vmem>>, vector<8x16x128xf32>
    %c8 = arith.constant 8 : index
    %c0_34 = arith.constant 0 : index
    %81 = vector.load %arg3[%c8, %c0_34] : memref<9x128xf32, #tpu.memory_space<vmem>>, vector<1x128xf32>
    %82 = vector.shape_cast %81 : vector<1x128xf32> to vector<128xf32>
    %83 = vector.shape_cast %82 : vector<128xf32> to vector<1x1x128xf32>
    %84 = vector.broadcast %83 : vector<1x1x128xf32> to vector<8x16x128xf32>
    %85 = arith.mulf %80, %84 : vector<8x16x128xf32>
    %86 = arith.addf %77, %85 : vector<8x16x128xf32>
    %c0_35 = arith.constant 0 : index
    %c0_36 = arith.constant 0 : index
    %87 = vector.load %arg4[%c0_35, %c0_36] : memref<1x128xf32, #tpu.memory_space<vmem>>, vector<1x128xf32>
    %88 = vector.shape_cast %87 : vector<1x128xf32> to vector<128xf32>
    %89 = vector.shape_cast %88 : vector<128xf32> to vector<1x1x128xf32>
    %90 = vector.broadcast %89 : vector<1x1x128xf32> to vector<8x16x128xf32>
    %91 = arith.mulf %86, %90 : vector<8x16x128xf32>
    %c0_37 = arith.constant 0 : index
    %c0_38 = arith.constant 0 : index
    %92 = vector.load %arg5[%c0_37, %c0_38] : memref<1x128xf32, #tpu.memory_space<vmem>>, vector<1x128xf32>
    %93 = vector.shape_cast %92 : vector<1x128xf32> to vector<128xf32>
    %94 = vector.shape_cast %93 : vector<128xf32> to vector<1x1x128xf32>
    %95 = vector.broadcast %94 : vector<1x1x128xf32> to vector<8x16x128xf32>
    %96 = arith.addf %91, %95 : vector<8x16x128xf32>
    %cst_39 = arith.constant 0.000000e+00 : f32
    %97 = vector.broadcast %cst_39 : f32 to vector<8x16x128xf32>
    %98 = arith.maximumf %96, %97 : vector<8x16x128xf32>
    %99 = vector.shape_cast %98 : vector<8x16x128xf32> to vector<128x128xf32>
    %100 = arith.truncf %99 : vector<128x128xf32> to vector<128x128xbf16>
    %c0_40 = arith.constant 0 : index
    %c0_41 = arith.constant 0 : index
    %101 = vector.load %arg6[%c0_40, %c0_41] : memref<128x128xbf16, #tpu.memory_space<vmem>>, vector<128x128xbf16>
    %cst_42 = arith.constant dense<0.000000e+00> : vector<128x128xf32>
    %102 = tpu.matmul %100, %101, %cst_42 {dimension_numbers = #tpu.dot_dimension_numbers<[1], [0], [0], [1], [0, 0, 1, 1], [], []>} : vector<128x128xbf16>, vector<128x128xbf16>, vector<128x128xf32> -> vector<128x128xf32>
    %c0_43 = arith.constant 0 : index
    %c0_44 = arith.constant 0 : index
    %103 = vector.load %arg7[%c0_43, %c0_44] : memref<1x128xf32, #tpu.memory_space<vmem>>, vector<1x128xf32>
    %104 = vector.shape_cast %103 : vector<1x128xf32> to vector<128xf32>
    %105 = vector.shape_cast %104 : vector<128xf32> to vector<1x128xf32>
    %106 = vector.broadcast %105 : vector<1x128xf32> to vector<128x128xf32>
    %107 = arith.mulf %102, %106 : vector<128x128xf32>
    %c0_45 = arith.constant 0 : index
    %c0_46 = arith.constant 0 : index
    %108 = vector.load %arg8[%c0_45, %c0_46] : memref<1x128xf32, #tpu.memory_space<vmem>>, vector<1x128xf32>
    %109 = vector.shape_cast %108 : vector<1x128xf32> to vector<128xf32>
    %110 = vector.shape_cast %109 : vector<128xf32> to vector<1x128xf32>
    %111 = vector.broadcast %110 : vector<1x128xf32> to vector<128x128xf32>
    %112 = arith.addf %107, %111 : vector<128x128xf32>
    %cst_47 = arith.constant 0.000000e+00 : f32
    %113 = vector.broadcast %cst_47 : f32 to vector<128x128xf32>
    %114 = arith.maximumf %112, %113 : vector<128x128xf32>
    %115 = vector.shape_cast %114 : vector<128x128xf32> to vector<8x16x128xf32>
    %116 = arith.truncf %115 : vector<8x16x128xf32> to vector<8x16x128xbf16>
    %c0_48 = arith.constant 0 : index
    %c0_49 = arith.constant 0 : index
    %c0_50 = arith.constant 0 : index
    %c0_51 = arith.constant 0 : index
    %117 = vector.load %arg9[%c0_48, %c0_49, %c0_50, %c0_51] : memref<1x8x16x128xbf16, #tpu.memory_space<vmem>>, vector<1x8x16x128xbf16>
    %118 = vector.shape_cast %117 : vector<1x8x16x128xbf16> to vector<8x16x128xbf16>
    %119 = vector.shape_cast %116 : vector<8x16x128xbf16> to vector<1x8x16x128xbf16>
    tpu.vector_store %arg9[%c0_48, %c0_49, %c0_50, %c0_51], %119 {strides = array<i32>} : memref<1x8x16x128xbf16, #tpu.memory_space<vmem>>, vector<1x8x16x128xbf16>,
    return
  }
  func.func @transform_0(%arg0: i32, %arg1: i32) -> (i32, i32, i32, i32) {
    %c0_i32 = arith.constant 0 : i32
    %c0_i32_0 = arith.constant 0 : i32
    %c0_i32_1 = arith.constant 0 : i32
    %c0_i32_2 = arith.constant 0 : i32
    return %arg0, %c0_i32, %c0_i32_0, %c0_i32_1 : i32, i32, i32, i32
  }
  func.func @transform_1(%arg0: i32, %arg1: i32) -> (i32, i32) {
    %c0_i32 = arith.constant 0 : i32
    %c0_i32_0 = arith.constant 0 : i32
    %c0_i32_1 = arith.constant 0 : i32
    return %c0_i32, %c0_i32_0 : i32, i32
  }
  func.func @transform_2(%arg0: i32, %arg1: i32) -> (i32, i32) {
    %c0_i32 = arith.constant 0 : i32
    %c0_i32_0 = arith.constant 0 : i32
    %c0_i32_1 = arith.constant 0 : i32
    return %c0_i32, %c0_i32_0 : i32, i32
  }
  func.func @transform_3(%arg0: i32, %arg1: i32) -> (i32, i32) {
    %c0_i32 = arith.constant 0 : i32
    %c0_i32_0 = arith.constant 0 : i32
    %c0_i32_1 = arith.constant 0 : i32
    return %c0_i32, %c0_i32_0 : i32, i32
  }
  func.func @transform_4(%arg0: i32, %arg1: i32) -> (i32, i32) {
    %c0_i32 = arith.constant 0 : i32
    %c0_i32_0 = arith.constant 0 : i32
    %c0_i32_1 = arith.constant 0 : i32
    return %c0_i32, %c0_i32_0 : i32, i32
  }
  func.func @transform_5(%arg0: i32, %arg1: i32) -> (i32, i32) {
    %c0_i32 = arith.constant 0 : i32
    %c0_i32_0 = arith.constant 0 : i32
    %c0_i32_1 = arith.constant 0 : i32
    return %c0_i32, %c0_i32_0 : i32, i32
  }
  func.func @transform_6(%arg0: i32, %arg1: i32) -> (i32, i32) {
    %c0_i32 = arith.constant 0 : i32
    %c0_i32_0 = arith.constant 0 : i32
    %c0_i32_1 = arith.constant 0 : i32
    return %c0_i32, %c0_i32_0 : i32, i32
  }
  func.func @transform_7(%arg0: i32, %arg1: i32) -> (i32, i32, i32, i32) {
    %c0_i32 = arith.constant 0 : i32
    %c0_i32_0 = arith.constant 0 : i32
    %c0_i32_1 = arith.constant 0 : i32
    return %arg0, %arg1, %c0_i32, %c0_i32_0 : i32, i32, i32, i32
  }
}

</mosaic_0001>

<bundles_post_ra>
// kernel: tpu_custom_call.1
= control target key start
LH: loop header
LB: loop body
LE: loop exit
PB: predicated region body
PF: predicated region fallthrough
CT: control target
= control target key end

     0   :  { %s3081_s0 = inlined_call_operand.hbm [shape: bf16[2,16,16,128], index: 0, kind: input, shape index: {}]   ;;  %s3082_s1 = inlined_call_operand.hbm [shape: f32[9,128], index: 1, kind: input, shape index: {}]   ;;  %s3083_s2 = inlined_call_operand.vmem [shape: f32[1,128], index: 2, kind: input, shape index: {}]   ;;  %s3084_s3 = inlined_call_operand.vmem [shape: f32[1,128], index: 3, kind: input, shape index: {}]   ;;  %s3085_s4 = inlined_call_operand.hbm [shape: bf16[128,128], index: 4, kind: input, shape index: {}]   ;;  %s3086_s5 = inlined_call_operand.vmem [shape: f32[1,128], index: 5, kind: input, shape index: {}]   ;;  %s3087_s6 = inlined_call_operand.vmem [shape: f32[1,128], index: 6, kind: input, shape index: {}]   ;;  %s3088_s7 = inlined_call_operand.hbm [shape: bf16[2,16,16,128], index: 7, kind: output, shape index: {}]  }
   0x1   :  { %3109 = sst [smem:[#allocation26_spill]] %s3082_s1 }
   0x2   :  { %3110 = sst [smem:[#allocation27_spill]] %s3085_s4 }
   0x3   :  { %3111 = sst [smem:[#allocation28_spill]] %s3086_s5 }
   0x4   :  { %3112 = sst [smem:[#allocation29_spill]] %s3087_s6 }
   0x5   :  { %3113 = sst [smem:[#allocation30_spill]] %s3088_s7 }
   0x6   :  { %12 = vsyncpa [#allocation4], 0 }
   0x7   :  { %14 = vsyncpa [#allocation4 + $0x1], 0 }
   0x8   :  { %15 = vsyncpa [#allocation7], 0 }
   0x9   :  { %16 = vsyncpa [#allocation5], 0 }
   0xa   :  { %18 = vsyncpa [#allocation5 + $0x1], 0  ;;  %s2253_s24 = smov 0   ;;  %s2255_s25 = smov 0  }
   0xb   :  { %s2257_s26 = smov 0   ;;  %s2259_s27 = smov 0  }
   0xc   :  { %s2261_s28 = smov 0   ;;  %s2263_s29 = smov 0  }
   0xd   :  { %s2265_s30 = smov 0   ;;  %s2267_s8 = smov 0  }
   0xe   :  { %s2269_s9 = smov 0   ;;  %s2271_s10 = smov 0  }
   0xf   :  { %s2273_s11 = smov 0  }
  0x10 LB: > { %3114 = sst [smem:[#allocation13_spill]] %s2160_s24  ;;  %s1489_s12 = sadd.s32 4294967295, %s2200_s11   ;;  %s2200_s11 = sphi %s2273_s11, %s24_s11   ;;  %s2196_s10 = sphi %s2271_s10, %s3167_s10   ;;  %s2192_s9 = sphi %s2269_s9, %s3166_s9   ;;  %s2188_s8 = sphi %s2267_s8, %s3165_s8   ;;  %s2184_s30 = sphi %s2265_s30, %s3157_s30   ;;  %s2180_s29 = sphi %s2263_s29, %s3164_s29   ;;  %s2176_s28 = sphi %s2261_s28, %s3163_s28   ;;  %s2172_s27 = sphi %s2259_s27, %s3162_s27   ;;  %s2168_s26 = sphi %s2257_s26, %s3161_s26   ;;  %s2164_s25 = sphi %s2255_s25, %s3160_s25   ;;  %s2160_s24 = sphi %s2253_s24, %s3159_s24  }
  0x11   : > { %3115 = sst [smem:[#allocation14_spill]] %s2188_s8  ;;  %s1490_s13 = sadd.s32 4294967294, %s2200_s11  }
  0x12   : > { %3116 = sst [smem:[#allocation15_spill]] %s2192_s9  ;;  %p56_p0 = scmp.ne.s32.totalorder %s2176_s28, %s2172_s27 }
  0x13   : > { %p2309_p1 = scmp.eq.s32.totalorder %s1489_s12, 0  ;;  %p207_p2 = scmp.ne.s32.totalorder %s2168_s26, %s2164_s25 }
  0x14   : > { %p208_p4 = scmp.eq.s32.totalorder %s1489_s12, 3  ;;  %p213_p5 = scmp.ne.s32.totalorder %s2164_s25, %s2160_s24 }
  0x15   : > { %s3117_s14 = scalar_select %p2309_p1, 1, 0 }
  0x16   : > { %p2318_p3 = por %p2309_p1, %p56_p0  ;;  %p214_p6 = scmp.eq.s32.totalorder %s1490_s13, 3 }
  0x17   : > { %p2324_p7 = por %p208_p4, %p207_p2  ;;  %p1491_p8 = scmp.ge.s32.totalorder %s2200_s11, 1 }
  0x18   : > { %p2329_p9 = por %p214_p6, %p213_p5  ;;  %p221_p10 = scmp.lt.s32.totalorder %s2200_s11, 5 }
  0x19   : > { %s3119_s17 = scalar_select %p2324_p7, 1, 0 }
  0x1a   : > { %s3121_s18 = scalar_select %p2329_p9, 1, 0 }
  0x1b   : > { %3120 = sst [smem:[#allocation16_spill]] %s3119_s17  ;;  %p2334_p11 = pnand %p1491_p8, %p221_p10 }
  0x1c   : > { %3122 = sst [smem:[#allocation17_spill]] %s3121_s18  ;;  %s2202_s20 = smov [#allocation6]  }
  0x1d   : > { %s233_s21 = sshll.u32 %s2202_s20, 4  ;;  %p1870_p12 = pneg %p2334_p11  ;;  %s234_s21 = int_to_ptr.vmem [resolvable:$true] %s233_s21 }
  0x1e   : > { %s2203_s23 = smov [#allocation8]   ;;  %s2007_s12 = scalar_lea.vmem %s234_s21, 256 }
  0x1f   : > { %p2342_p13 = pnand %p1870_p12, %p2309_p1  ;;  %s252_s27 = sshll.u32 %s2203_s23, 4  ;;  %s253_s27 = int_to_ptr.vmem [resolvable:$true] %s252_s27 }
  0x20   : > { %p2008_p2 = scmp.ne.s32.totalorder %s234_s21, %s2007_s12  ;;  %p2015_p6 = scmp.lt.s32.totalorder %s234_s21, %s234_s21 }
  0x21   : > { %p1998_p0 = pneg %p2342_p13  ;;  %p2016_p8 = scmp.lt.s32.totalorder %s2007_s12, %s2007_s12 }
  0x23   : > { %p2010_p4 = pnand %p2008_p2, %p1998_p0  ;;  %p2017_p10 = por %p2016_p8, %p2015_p6 }
  0x25   : > { %p2011_p5 = pneg %p2010_p4 }
  0x27   : > { %p2018_p12 = pnand %p2017_p10, %p2011_p5 }
  0x29   : > { %2021 = shalt.err (!%p2018_p12)
}
  0x2a   : > { %s2204_s13 = smov 128   ;;  %s2205_s20 = smov 8  }
  0x2b   : > { %s3125_s1 = sld [smem:[#allocation26_spill]]  ;;  %s2033_s18 = scalar_lea.vmem %s253_s27, 1024 }
  0x2c   : > { %p2034_p9 = scmp.ne.s32.totalorder %s253_s27, %s2033_s18  ;;  %p2041_p7 = scmp.lt.s32.totalorder %s253_s27, %s253_s27 }
  0x2d   : > { %p2042_p1 = scmp.lt.s32.totalorder %s2033_s18, %s2033_s18 }
  0x2e   : > { %p2036_p2 = pnand %p2034_p9, %p1998_p0 }
  0x2f   : > { %p2043_p6 = por %p2042_p1, %p2041_p7 }
  0x30   : > { %p2037_p4 = pneg %p2036_p2 }
  0x31   : > { %1873 = dma.hbm_to_vmem [thread:$0]  (!%p2342_p13), %s3125_s1, 256, %s234_s21, [#allocation7], %s2204_s13, %s2204_s13, %s2205_s20  }
  0x32   : > { %p2044_p5 = pnand %p2043_p6, %p2037_p4 }
  0x34   : > { %2047 = shalt.err (!%p2044_p5)
}
  0x35   : > { %s3093_s12 = smov 64   ;;  %s3094_s15 = smov 4  }
  0x36   : > { %s3126_s4 = sld [smem:[#allocation27_spill]]  ;;  %s33_s13 = sadd.s32 1, %s2192_s9 }
  0x37   : > { %s36_s20 = sadd.s32 1, %s2196_s10  ;;  %p34_p1 = scmp.ge.s32.totalorder %s33_s13, 2 }
  0x38   : > { %s43_s23 = sadd.s32 1, %s2180_s29  ;;  %p50_p7 = scmp.ne.s32.totalorder %s2180_s29, %s2176_s28 }
  0x39   : > { %p51_p9 = scmp.eq.s32.totalorder %s2200_s11, 0  ;;  %s3169_s13 = smov (%p34_p1, %s33_s13), 0 }
  0x3a   : > { %3127 = sst [smem:[#allocation18_spill]] %s3169_s13  ;;  %s3171_s20 = smov (!%p34_p1, %s36_s20), %s2196_s10 }
  0x3b   : > { %p2376_p0 = por %p51_p9, %p50_p7  ;;  %s193_s18 = ssub.s32 %s2192_s9, %s3169_s13 }
  0x3c   : > { %1876 = dma.hbm_to_vmem [thread:$0]  (!%p2342_p13), %s3126_s4, 1024, %s253_s27, [#allocation7], %s3093_s12, %s3093_s12, %s3094_s15  }
  0x3d   : > { %p38_p13 = scmp.ge.s32.totalorder %s3171_s20, 2  ;;  %p1887_p8 = scmp.lt.s32.totalorder %s2200_s11, 4 }
  0x3e   : > { %s272_s27 = sand.u32 1, %s2180_s29   ;;  %s1650_s21 = sshll.u32 %s2196_s10, 11 }
  0x3f   : > { %s3173_s20 = smov (%p38_p13, %s3171_s20), 0  ;;  %s1495_s12 = sshll.u32 %s272_s27, 7 }
  0x40   : > { %s40_s15 = ssub.s32 %s2196_s10, %s3173_s20  ;;  %s282_s7 = scalar_lea.hbm %s3081_s0, %s1650_s21 }
  0x41   : > { %p41_p10 = scmp.eq.s32.totalorder %s40_s15, 0  ;;  %s194_s1 = sor.u32 %s193_s18, %s40_s15 }
  0x42   : > { %p195_p12 = scmp.eq.s32.totalorder %s194_s1, 0  ;;  %s3129_s13 = sadd.s32 1, %s2168_s26 }
  0x43   : > { %s2393_s17 = scalar_select %p41_p10, %s2180_s29, %s43_s23  }
  0x44   : > { %s2398_s9 = scalar_select %p195_p12, %s2168_s26, %s3129_s13  }
  0x45   : > { %s276_s8 = scalar_lea.vmem [#allocation3], %s1495_s12  ;;  %p2404_p2 = pnand %p1887_p8, %p2376_p0 }
  0x46   : > { %s283_s6 = sshll.u32 %s276_s8, 4  ;;  %s273_s1 = scalar_lea.sflag [#allocation4], %s272_s27  ;;  %s284_s6 = int_to_ptr.vmem [resolvable:$true] %s283_s6 }
  0x47   : > { %p2050_p4 = pneg %p2404_p2  ;;  %s2061_s4 = scalar_lea.vmem %s284_s6, 2048 }
  0x48   : > { %p2062_p6 = scmp.ne.s32.totalorder %s284_s6, %s2061_s4  ;;  %s2208_s24 = smov [#allocation3]  }
  0x49   : > { %s2066_s15 = sshll.u32 %s2208_s24, 4  ;;  %s2067_s15 = int_to_ptr.vmem [resolvable:$false] %s2066_s15 }
  0x4a   : > { %p2064_p5 = pnand %p2062_p6, %p2050_p4  ;;  %s2068_s12 = scalar_lea.vmem %s2067_s15, 4096 }
  0x4b   : > { %p2069_p7 = scmp.lt.s32.totalorder %s284_s6, %s2067_s15  ;;  %p2070_p9 = scmp.lt.s32.totalorder %s2068_s12, %s2061_s4 }
  0x4c   : > { %p2065_p1 = pneg %p2064_p5 }
  0x4d   : > { %p2071_p13 = por %p2070_p9, %p2069_p7 }
  0x4f   : > { %p2072_p0 = pnand %p2071_p13, %p2065_p1 }
  0x51   : > { %2075 = shalt.err (!%p2072_p0)
}
  0x52   : > { %s3131_s8 = smov 4   ;;  %s3132_s13 = smov 64  }
  0x53   : > { %1880 = dma.hbm_to_vmem [thread:$0]  (!%p2404_p2), %s282_s7, 2048, %s284_s6, %s273_s1, %s3132_s13, %s3132_s13, %s3131_s8  }
  0x54   : > { %295 = sbr.rel (%p2334_p11) target bundleno = 472 (0x1d8), region = 48 }
  0x59   : > { %s297_s23 = sand.u32 1, %s2176_s28  }
  0x5a   : > { %s1499_s22 = sshll.u32 %s297_s23, 7  ;;  %s298_s18 = scalar_lea.sflag [#allocation4], %s297_s23 }
  0x5b   : > { %s2418_s27 = scalar_lea.vmem [#allocation3], %s1499_s22 }
  0x5c   : > { %2147 = dma.done.wait (%p2318_p3), %s298_s18, 2048  }
  0x5d   : > { %2149 = vsyncadd (%p2318_p3), %s298_s18, 4294965248  ;;  %p3133_p8 = scmp.ne.s32.totalorder %s3117_s14, 0 }
  0x5f   : > { %2151 = dma.done.wait (%p3133_p8), [#allocation7], 1280  }
  0x60   : > { %2153 = vsyncadd (%p3133_p8), [#allocation7], 4294966016  ;;  %s337_s5 = sand.u32 1, %s2164_s25   ;;  %p1503_p11 = scmp.ne.s32.totalorder %s2184_s30, 0 }
  0x61   : > { %s1502_s6 = sshll.u32 %s337_s5, 6 }
  0x62   : > { %s2431_s7 = scalar_lea.vmem [#allocation9], %s1502_s6  ;;  %345 = sbr.rel (%p1503_p11) target bundleno = 147 (0x93), region = 64 }
  0x67   : > { %v2435_v0 = vld [vmem:[%s2418_s27] sm:$0xff]   ;;  %v2438_v1 = vld [vmem:[%s2418_s27 + $0x8] sm:$0xff]   ;;  %v2441_v2 = vld [vmem:[%s2418_s27 + $0x10] sm:$0xff]   ;;  %v2209_v3 = vmov 0.0  }
  0x68   : > { %349 = vst [vmem:[#allocation2 + $0x18] sm:$0xff] %v2209_v3  ;;  %346 = vst [vmem:[#allocation2] sm:$0xff] %v2209_v3  ;;  %v1670_v4 = vunpack.c.l.bf16 %v2435_v0  ;;  %v1671_v5 = vunpack.c.h.bf16 %v2435_v0  ;;  %v1674_v6 = vunpack.c.l.bf16 %v2438_v1  ;;  %v1675_v7 = vunpack.c.h.bf16 %v2438_v1  ;;  %v1774_v8 = vld [vmem:[%s2418_s27 + $0x18] sm:$0xff]   ;;  %v1775_v9 = vld [vmem:[%s2418_s27 + $0x20] sm:$0xff]  }
  0x69   : > { %347 = vst [vmem:[#allocation2 + $0x8] sm:$0xff] %v2209_v3  ;;  %348 = vst [vmem:[#allocation2 + $0x10] sm:$0x3] %v2209_v3  ;;  %v1776_v10 = vld [vmem:[%s2418_s27 + $0x28] sm:$0xff]   ;;  %v1678_v11 = vunpack.c.l.bf16 %v2441_v2  ;;  %v1679_v12 = vunpack.c.h.bf16 %v2441_v2  ;;  %v1682_v13 = vunpack.c.l.bf16 %v1774_v8  ;;  %v1683_v14 = vunpack.c.h.bf16 %v1774_v8  ;;  %v1777_v15 = vld [vmem:[%s2418_s27 + $0x30] sm:$0xff]  }
  0x6a   : > { %350 = vst [vmem:[#allocation2 + $0x20] sm:$0xff] %v2209_v3  ;;  %351 = vst [vmem:[#allocation2 + $0x28] sm:$0x3] %v2209_v3  ;;  %v1778_v16 = vld [vmem:[%s2418_s27 + $0x38] sm:$0xff]   ;;  %v1779_v17 = vld [vmem:[%s2418_s27 + $0x40] sm:$0xff]   ;;  %v1686_v18 = vunpack.c.l.bf16 %v1775_v9  ;;  %v1687_v19 = vunpack.c.h.bf16 %v1775_v9  ;;  %v1690_v20 = vunpack.c.l.bf16 %v1776_v10  ;;  %v1691_v21 = vunpack.c.h.bf16 %v1776_v10 }
  0x6b   : > { %352 = vst [vmem:[#allocation2 + $0x30] sm:$0xff] %v2209_v3  ;;  %353 = vst [vmem:[#allocation2 + $0x38] sm:$0xff] %v2209_v3  ;;  %v1780_v22 = vld [vmem:[%s2418_s27 + $0x48] sm:$0xff]   ;;  %v1781_v23 = vld [vmem:[%s2418_s27 + $0x50] sm:$0xff]   ;;  %v1694_v25 = vunpack.c.l.bf16 %v1777_v15  ;;  %v1695_v26 = vunpack.c.h.bf16 %v1777_v15  ;;  %v1698_v27 = vunpack.c.l.bf16 %v1778_v16  ;;  %v1699_v28 = vunpack.c.h.bf16 %v1778_v16 }
  0x6c   : > { %354 = vst [vmem:[#allocation2 + $0x40] sm:$0x3] %v2209_v3  ;;  %355 = vst [vmem:[#allocation2 + $0x48] sm:$0xff] %v2209_v3  ;;  %v1782_v24 = vld [vmem:[%s2418_s27 + $0x58] sm:$0xff]   ;;  %v1783_v29 = vld [vmem:[%s2418_s27 + $0x60] sm:$0xff]   ;;  %v1702_v31 = vunpack.c.l.bf16 %v1779_v17  ;;  %v1703_v32 = vunpack.c.h.bf16 %v1779_v17  ;;  %v1706_v33 = vunpack.c.l.bf16 %v1780_v22  ;;  %v1707_v34 = vunpack.c.h.bf16 %v1780_v22 }
  0x6d   : > { %356 = vst [vmem:[#allocation2 + $0x50] sm:$0xff] %v2209_v3  ;;  %357 = vst [vmem:[#allocation2 + $0x58] sm:$0x3] %v2209_v3  ;;  %v1784_v30 = vld [vmem:[%s2418_s27 + $0x68] sm:$0xff]   ;;  %v1785_v35 = vld [vmem:[%s2418_s27 + $0x70] sm:$0xff]   ;;  %v1710_v37 = vunpack.c.l.bf16 %v1781_v23  ;;  %v1711_v38 = vunpack.c.h.bf16 %v1781_v23  ;;  %v1714_v39 = vunpack.c.l.bf16 %v1782_v24  ;;  %v1715_v40 = vunpack.c.h.bf16 %v1782_v24 }
  0x6e   : > { %358 = vst [vmem:[#allocation2 + $0x60] sm:$0xff] %v2209_v3  ;;  %359 = vst [vmem:[#allocation2 + $0x68] sm:$0xff] %v2209_v3  ;;  %v1786_v36 = vld [vmem:[%s2418_s27 + $0x78] sm:$0xff]   ;;  %v1718_v41 = vunpack.c.l.bf16 %v1783_v29  ;;  %v1719_v42 = vunpack.c.h.bf16 %v1783_v29  ;;  %v1722_v43 = vunpack.c.l.bf16 %v1784_v30  ;;  %v1723_v44 = vunpack.c.h.bf16 %v1784_v30 }
  0x6f   : > { %360 = vst [vmem:[#allocation2 + $0x70] sm:$0x3] %v2209_v3  ;;  %361 = vst [vmem:[#allocation2 + $0x78] sm:$0xff] %v2209_v3  ;;  %v1726_v45 = vunpack.c.l.bf16 %v1785_v35  ;;  %v1727_v46 = vunpack.c.h.bf16 %v1785_v35  ;;  %v1730_v47 = vunpack.c.l.bf16 %v1786_v36  ;;  %v1731_v48 = vunpack.c.h.bf16 %v1786_v36 }
  0x70   : > { %362 = vst [vmem:[#allocation2 + $0x80] sm:$0xff] %v2209_v3  ;;  %363 = vst [vmem:[#allocation2 + $0x88] sm:$0x3] %v2209_v3 }
  0x71   : > { %364 = vst [vmem:[#allocation2 + $0x90] sm:$0xff] %v2209_v3  ;;  %365 = vst [vmem:[#allocation2 + $0x98] sm:$0xff] %v2209_v3 }
  0x72   : > { %366 = vst [vmem:[#allocation2 + $0xa0] sm:$0x3] %v2209_v3  ;;  %367 = vst [vmem:[#allocation2 + $0xa8] sm:$0xff] %v2209_v3 }
  0x73   : > { %368 = vst [vmem:[#allocation2 + $0xb0] sm:$0xff] %v2209_v3  ;;  %369 = vst [vmem:[#allocation2 + $0xb8] sm:$0x3] %v2209_v3 }
  0x74   : > { %370 = vst [vmem:[#allocation2 + $0xc0] sm:$0xff] %v2209_v3  ;;  %371 = vst [vmem:[#allocation2 + $0xc8] sm:$0xff] %v2209_v3 }
  0x75   : > { %372 = vst [vmem:[#allocation2 + $0xd0] sm:$0x3] %v2209_v3  ;;  %373 = vst [vmem:[#allocation2 + $0xd8] sm:$0xff] %v2209_v3 }
  0x76   : > { %374 = vst [vmem:[#allocation2 + $0xe0] sm:$0xff] %v2209_v3  ;;  %375 = vst [vmem:[#allocation2 + $0xe8] sm:$0x3] %v2209_v3 }
  0x77   : > { %376 = vst [vmem:[#allocation2 + $0xf0] sm:$0xff] %v2209_v3  ;;  %377 = vst [vmem:[#allocation2 + $0xf8] sm:$0xff] %v2209_v3 }
  0x78   : > { %378 = vst [vmem:[#allocation2 + $0x100] sm:$0x3] %v2209_v3  ;;  %379 = vst [vmem:[#allocation2 + $0x108] sm:$0xff] %v2209_v3 }
  0x79   : > { %380 = vst [vmem:[#allocation2 + $0x110] sm:$0xff] %v2209_v3  ;;  %381 = vst [vmem:[#allocation2 + $0x118] sm:$0x3] %v2209_v3 }
  0x7a   : > { %382 = vst [vmem:[#allocation2 + $0x120] sm:$0xff] %v2209_v3  ;;  %383 = vst [vmem:[#allocation2 + $0x128] sm:$0xff] %v2209_v3 }
  0x7b   : > { %384 = vst [vmem:[#allocation2 + $0x130] sm:$0x3] %v2209_v3  ;;  %385 = vst [vmem:[#allocation2 + $0x138] sm:$0xff] %v2209_v3 }
  0x7c   : > { %386 = vst [vmem:[#allocation2 + $0x140] sm:$0xff] %v2209_v3  ;;  %387 = vst [vmem:[#allocation2 + $0x148] sm:$0x3] %v2209_v3 }
  0x7d   : > { %388 = vst [vmem:[#allocation2 + $0x150] sm:$0xff] %v2209_v3  ;;  %389 = vst [vmem:[#allocation2 + $0x158] sm:$0xff] %v2209_v3 }
  0x7e   : > { %390 = vst [vmem:[#allocation2 + $0x160] sm:$0x3] %v2209_v3  ;;  %391 = vst [vmem:[#allocation2 + $0x168] sm:$0xff] %v2209_v3 }
  0x7f   : > { %392 = vst [vmem:[#allocation2 + $0x170] sm:$0xff] %v2209_v3  ;;  %393 = vst [vmem:[#allocation2 + $0x178] sm:$0x3] %v2209_v3 }
  0x80   : > { %394 = vst [vmem:[#allocation2 + $0x180] sm:$0xff] %v2209_v3  ;;  %395 = vst [vmem:[#allocation2 + $0x188] sm:$0xff] %v2209_v3 }
  0x81   : > { %396 = vst [vmem:[#allocation2 + $0x190] sm:$0x3] %v2209_v3  ;;  %397 = vst [vmem:[#allocation2 + $0x198] sm:$0xff] %v2209_v3 }
  0x82   : > { %398 = vst [vmem:[#allocation2 + $0x1a0] sm:$0xff] %v2209_v3  ;;  %399 = vst [vmem:[#allocation2 + $0x1a8] sm:$0x3] %v2209_v3 }
  0x83   : > { %465 = vst [vmem:[#allocation2 + $0x19] sm:$0xff] %v1670_v4  ;;  %466 = vst [vmem:[#allocation2 + $0x21] sm:$0xff] %v1671_v5 }
  0x84   : > { %467 = vst [vmem:[#allocation2 + $0x31] sm:$0xff] %v1674_v6  ;;  %468 = vst [vmem:[#allocation2 + $0x39] sm:$0xff] %v1675_v7 }
  0x85   : > { %469 = vst [vmem:[#allocation2 + $0x49] sm:$0xff] %v1678_v11  ;;  %470 = vst [vmem:[#allocation2 + $0x51] sm:$0xff] %v1679_v12 }
  0x86   : > { %471 = vst [vmem:[#allocation2 + $0x61] sm:$0xff] %v1682_v13  ;;  %472 = vst [vmem:[#allocation2 + $0x69] sm:$0xff] %v1683_v14 }
  0x87   : > { %473 = vst [vmem:[#allocation2 + $0x79] sm:$0xff] %v1686_v18  ;;  %474 = vst [vmem:[#allocation2 + $0x81] sm:$0xff] %v1687_v19 }
  0x88   : > { %475 = vst [vmem:[#allocation2 + $0x91] sm:$0xff] %v1690_v20  ;;  %476 = vst [vmem:[#allocation2 + $0x99] sm:$0xff] %v1691_v21 }
  0x89   : > { %477 = vst [vmem:[#allocation2 + $0xa9] sm:$0xff] %v1694_v25  ;;  %478 = vst [vmem:[#allocation2 + $0xb1] sm:$0xff] %v1695_v26 }
  0x8a   : > { %479 = vst [vmem:[#allocation2 + $0xc1] sm:$0xff] %v1698_v27  ;;  %480 = vst [vmem:[#allocation2 + $0xc9] sm:$0xff] %v1699_v28 }
  0x8b   : > { %481 = vst [vmem:[#allocation2 + $0xd9] sm:$0xff] %v1702_v31  ;;  %482 = vst [vmem:[#allocation2 + $0xe1] sm:$0xff] %v1703_v32 }
  0x8c   : > { %483 = vst [vmem:[#allocation2 + $0xf1] sm:$0xff] %v1706_v33  ;;  %484 = vst [vmem:[#allocation2 + $0xf9] sm:$0xff] %v1707_v34 }
  0x8d   : > { %485 = vst [vmem:[#allocation2 + $0x109] sm:$0xff] %v1710_v37  ;;  %486 = vst [vmem:[#allocation2 + $0x111] sm:$0xff] %v1711_v38 }
  0x8e   : > { %487 = vst [vmem:[#allocation2 + $0x121] sm:$0xff] %v1714_v39  ;;  %488 = vst [vmem:[#allocation2 + $0x129] sm:$0xff] %v1715_v40 }
  0x8f   : > { %489 = vst [vmem:[#allocation2 + $0x139] sm:$0xff] %v1718_v41  ;;  %490 = vst [vmem:[#allocation2 + $0x141] sm:$0xff] %v1719_v42 }
  0x90   : > { %491 = vst [vmem:[#allocation2 + $0x151] sm:$0xff] %v1722_v43  ;;  %492 = vst [vmem:[#allocation2 + $0x159] sm:$0xff] %v1723_v44 }
  0x91   : > { %493 = vst [vmem:[#allocation2 + $0x169] sm:$0xff] %v1726_v45  ;;  %494 = vst [vmem:[#allocation2 + $0x171] sm:$0xff] %v1727_v46 }
  0x92   : > { %495 = vst [vmem:[#allocation2 + $0x181] sm:$0xff] %v1730_v47  ;;  %496 = vst [vmem:[#allocation2 + $0x189] sm:$0xff] %v1731_v48 }
  0x93 PF: > { %v1988_v49 = vld [vmem:[#allocation8 + $0x38] sm:$0xff]   ;;  %v1989_v50 = vld [vmem:[#allocation8 + $0x30] sm:$0xff]   ;;  %s1505_s14 = smul.u32 192, %s2184_s30  ;;  %v1990_v51 = vld [vmem:[#allocation8 + $0x28] sm:$0xff]   ;;  %s3148_s12 = sld [smem:[#allocation28_spill]] }
  0x94   : > { %1810 = vmatprep.subr.bf16.mxu0 %v1988_v49  ;;  %1842 = vmatprep.subr.bf16.mxu1 %v1988_v49  ;;  %v1991_v52 = vld [vmem:[#allocation8 + $0x20] sm:$0xff]   ;;  %v2467_v55 = vld [vmem:[#allocation6] ss:$0 sm:$0xff]  ;;  %v2473_v60 = vld [vmem:[#allocation6 + $0x1] ss:$0 sm:$0xff]  ;;  %s3149_s23 = sld [smem:[#allocation29_spill]] }
  0x95   : > { %1811 = vmatpush3.bf16.msra.mxu0 %v1988_v49  ;;  %1850 = vmatpush3.bf16.msra.mxu1 %v1988_v49  ;;  %s2463_s16 = scalar_lea.vmem [#allocation2], %s1505_s14  ;;  %v2475_v61 = vld [vmem:[#allocation8 + $0x18] sm:$0xff]   ;;  %v2481_v2 = vld [vmem:[#allocation6 + $0x2] ss:$0 sm:$0xff]  ;;  %v2487_v7 = vld [vmem:[#allocation6 + $0x3] ss:$0 sm:$0xff] }
  0x96   : > { %1812 = vmatprep.subr.bf16.mxu0 %v1989_v50  ;;  %1843 = vmatprep.subr.bf16.mxu1 %v1989_v50  ;;  %v2492_v13 = vld [vmem:[#allocation6 + $0x4] ss:$0 sm:$0xff]  ;;  %v2503_v19 = vld [vmem:[#allocation6 + $0x5] ss:$0 sm:$0xff]  ;;  %v2518_v28 = vld [vmem:[#allocation6 + $0x6] ss:$0 sm:$0xff] }
  0x97   : > { %v1993_v21 = vld [vmem:[#allocation8 + $0x10] sm:$0xff]   ;;  %v2545_v40 = vld [vmem:[#allocation6 + $0x8] ss:$0 sm:$0xff]  ;;  %s3150_s22 = sld [smem:[#allocation14_spill]]  ;;  %s1667_s18 = sshll.u32 %s2184_s30, 4 }
  0x98   : > { %v2530_v33 = vld [vmem:[#allocation6 + $0x7] ss:$0 sm:$0xff]  ;;  %s3151_s30 = sld [smem:[#allocation16_spill]]  ;;  %s3021_s24 = scalar_lea.sflag [#allocation5], %s337_s5 }
  0x99   : > { %1813 = vmatpush3.bf16.msra.mxu0 %v1989_v50  ;;  %1851 = vmatpush3.bf16.msra.mxu1 %v1989_v50  ;;  %v500_v53 = vld [vmem:[%s2463_s16] sm:$0xff]  ;;  %v501_v54 = vld [vmem:[%s2463_s16 + $0x8] sm:$0xff]  ;;  %v1511_v5 = vld [vmem:[%s2463_s16 + $0x18] sm:$0xff]  ;;  %s3152_s1 = sld [smem:[#allocation30_spill]] }
  0x9a   : > { %1814 = vmatprep.subr.bf16.mxu0 %v1990_v51  ;;  %1844 = vmatprep.subr.bf16.mxu1 %v1990_v51  ;;  %v521_v56 = vmul.f32 %v2467_v55, %v500_v53  ;;  %v522_v57 = vmul.f32 %v2467_v55, %v501_v54  ;;  %v553_v58 = vld [vmem:[%s2463_s16 + $0x1] sm:$0xff]  ;;  %v554_v59 = vld [vmem:[%s2463_s16 + $0x9] sm:$0xff]  ;;  %v683_v10 = vmul.f32 %v2487_v7, %v1511_v5  ;;  %v1528_v11 = vld [vmem:[%s2463_s16 + $0x19] sm:$0xff] }
  0x9b   : > { %v574_v62 = vmul.f32 %v2473_v60, %v553_v58  ;;  %v575_v63 = vmul.f32 %v2473_v60, %v554_v59  ;;  %v606_v0 = vld [vmem:[%s2463_s16 + $0x2] sm:$0xff]  ;;  %v607_v1 = vld [vmem:[%s2463_s16 + $0xa] sm:$0xff]  ;;  %v736_v15 = vmul.f32 %v2492_v13, %v1528_v11  ;;  %v2498_v17 = vld [vmem:[%s2463_s16 + $0x1a] sm:$0xff]  ;;  %v2506_v20 = vmul.f32 %v1511_v5, %v2467_v55 }
  0x9c   : > { %v627_v3 = vmul.f32 %v2481_v2, %v606_v0  ;;  %v628_v4 = vmul.f32 %v2481_v2, %v607_v1  ;;  %v1512_v6 = vld [vmem:[%s2463_s16 + $0x20] sm:$0xff]  ;;  %v789_v24 = vmul.f32 %v2503_v19, %v2498_v17  ;;  %v2513_v26 = vld [vmem:[%s2463_s16 + $0x30] sm:$0xff]  ;;  %v2516_v27 = vld [vmem:[%s2463_s16 + $0x38] sm:$0xff]  ;;  %v2557_v45 = vmul.f32 %v1528_v11, %v2473_v60 }
  0x9d   : > { %1815 = vmatpush3.bf16.msra.mxu0 %v1990_v51  ;;  %1852 = vmatpush3.bf16.msra.mxu1 %v1990_v51  ;;  %v590_v8 = vadd.f32 %v574_v62, %v521_v56  ;;  %v591_v9 = vadd.f32 %v575_v63, %v522_v57  ;;  %v1529_v12 = vld [vmem:[%s2463_s16 + $0x21] sm:$0xff]  ;;  %v684_v14 = vmul.f32 %v2487_v7, %v1512_v6  ;;  %v2525_v31 = vld [vmem:[%s2463_s16 + $0x31] sm:$0xff]  ;;  %v2528_v32 = vld [vmem:[%s2463_s16 + $0x39] sm:$0xff]  ;;  %s1646_s27 = sshll.u32 %s3150_s22, 5 }
  0x9e   : > { %1816 = vmatprep.subr.bf16.mxu0 %v1991_v52  ;;  %1845 = vmatprep.subr.bf16.mxu1 %v1991_v52  ;;  %v737_v16 = vmul.f32 %v2492_v13, %v1529_v12  ;;  %v2501_v18 = vld [vmem:[%s2463_s16 + $0x22] sm:$0xff]  ;;  %v845_v29 = vmul.f32 %v2518_v28, %v2513_v26  ;;  %v846_v30 = vmul.f32 %v2518_v28, %v2516_v27  ;;  %v2540_v38 = vld [vmem:[%s2463_s16 + $0x32] sm:$0xff]  ;;  %v2543_v39 = vld [vmem:[%s2463_s16 + $0x3a] sm:$0xff]  ;;  %s1370_s6 = sadd.s32 %s1667_s18, %s1646_s27  ;;  %p3153_p10 = scmp.ne.s32.totalorder %s3151_s30, 0 }
  0x9f   : > { %v643_v22 = vadd.f32 %v627_v3, %v590_v8  ;;  %v644_v23 = vadd.f32 %v628_v4, %v591_v9  ;;  %v790_v25 = vmul.f32 %v2503_v19, %v2501_v18  ;;  %v2533_v34 = vmul.f32 %v1512_v6, %v2467_v55  ;;  %v2554_v44 = vld [vmem:[%s2463_s16 + $0x60] sm:$0xff]  ;;  %v2560_v48 = vld [vmem:[%s2463_s16 + $0x68] sm:$0xff]  ;;  %v2590_v0 = vld [vmem:[%s2463_s16 + $0x78] sm:$0xff]  ;;  %s1647_s14 = sshll.u32 %s1370_s6, 6 }
  0xa0   : > { %v898_v37 = vmul.f32 %v2530_v33, %v2525_v31  ;;  %v899_v41 = vmul.f32 %v2530_v33, %v2528_v32  ;;  %v951_v42 = vmul.f32 %v2545_v40, %v2540_v38  ;;  %v952_v43 = vmul.f32 %v2545_v40, %v2543_v39  ;;  %v2565_v50 = vld [vmem:[%s2463_s16 + $0x61] sm:$0xff]  ;;  %v2568_v51 = vld [vmem:[%s2463_s16 + $0x69] sm:$0xff]  ;;  %3134 = vst [vmem:[#allocation19_spill] sm:$0xff] %v2590_v0  ;;  %v2600_v8 = vld [vmem:[%s2463_s16 + $0x79] sm:$0xff]  ;;  %s3013_s4 = scalar_lea.hbm %s3152_s1, %s1647_s14 }
  0xa1   : > { %1817 = vmatpush3.bf16.msra.mxu0 %v1991_v52  ;;  %1853 = vmatpush3.bf16.msra.mxu1 %v1991_v52  ;;  %v699_v35 = vadd.f32 %v683_v10, %v643_v22  ;;  %v700_v36 = vadd.f32 %v684_v14, %v644_v23  ;;  %v529_v49 = vmul.f32 %v2467_v55, %v2554_v44  ;;  %v2582_v57 = vld [vmem:[%s2463_s16 + $0x62] sm:$0xff]  ;;  %v2585_v58 = vld [vmem:[%s2463_s16 + $0x6a] sm:$0xff]  ;;  %v2612_v23 = vld [vmem:[%s2463_s16 + $0x7a] sm:$0xff] }
  0xa2   : > { %1818 = vmatprep.subr.bf16.mxu0 %v2475_v61  ;;  %1846 = vmatprep.subr.bf16.mxu1 %v2475_v61  ;;  %v2571_v52 = vmul.f32 %v1529_v12, %v2473_v60  ;;  %v530_v53 = vmul.f32 %v2467_v55, %v2560_v48  ;;  %v582_v54 = vmul.f32 %v2473_v60, %v2565_v50  ;;  %v1994_v59 = vld [vmem:[#allocation8 + $0x8] sm:$0xff]   ;;  %v2595_v5 = vld [vmem:[%s2463_s16 + $0x80] sm:$0xff] }
  0xa3   : > { %v752_v46 = vadd.f32 %v736_v15, %v699_v35  ;;  %v753_v47 = vadd.f32 %v737_v16, %v700_v36  ;;  %v583_v56 = vmul.f32 %v2473_v60, %v2568_v51  ;;  %v635_v63 = vmul.f32 %v2481_v2, %v2582_v57  ;;  %3135 = vst [vmem:[#allocation20_spill] sm:$0xff] %v2595_v5  ;;  %v2605_v12 = vld [vmem:[%s2463_s16 + $0x81] sm:$0xff]  ;;  %v2620_v35 = vld [vmem:[%s2463_s16 + $0x90] sm:$0xff]  ;;  %v2625_v36 = vld [vmem:[%s3083_s2] ss:$0 sm:$0xff] }
  0xa4   : > { %v598_v1 = vadd.f32 %v582_v54, %v529_v49  ;;  %v636_v4 = vmul.f32 %v2481_v2, %v2585_v58  ;;  %v691_v6 = vmul.f32 %v2487_v7, %v2590_v0  ;;  %3136 = vst [vmem:[#allocation21_spill] sm:$0xff] %v2600_v8  ;;  %v692_v11 = vmul.f32 %v2487_v7, %v2595_v5 }
  0xa5   : > { %1819 = vmatpush3.bf16.msra.mxu0 %v2475_v61  ;;  %1854 = vmatpush3.bf16.msra.mxu1 %v2475_v61  ;;  %v805_v61 = vadd.f32 %v789_v24, %v752_v46  ;;  %v806_v62 = vadd.f32 %v790_v25, %v753_v47  ;;  %v599_v3 = vadd.f32 %v583_v56, %v530_v53  ;;  %v1995_v24 = vld [vmem:[#allocation8] sm:$0xff]   ;;  %v2635_v53 = vld [vmem:[%s2463_s16 + $0x91] sm:$0xff] }
  0xa6   : > { %1820 = vmatprep.subr.bf16.mxu0 %v1993_v21  ;;  %1847 = vmatprep.subr.bf16.mxu1 %v1993_v21  ;;  %3137 = vst [vmem:[#allocation22_spill] sm:$0xff] %v2605_v12  ;;  %v744_v14 = vmul.f32 %v2492_v13, %v2600_v8  ;;  %v651_v15 = vadd.f32 %v635_v63, %v598_v1  ;;  %3138 = vst [vmem:[#allocation23_spill] sm:$0xff] %v2612_v23  ;;  %v2647_v1 = vld [vmem:[%s3084_s3] ss:$0 sm:$0xff] }
  0xa7   : > { %v861_v9 = vadd.f32 %v845_v29, %v805_v61  ;;  %v862_v10 = vadd.f32 %v846_v30, %v806_v62  ;;  %v652_v16 = vadd.f32 %v636_v4, %v599_v3  ;;  %v745_v22 = vmul.f32 %v2492_v13, %v2605_v12  ;;  %v2615_v30 = vld [vmem:[%s2463_s16 + $0x82] sm:$0xff]  ;;  %v2640_v62 = vld [vmem:[%s2463_s16 + $0x99] sm:$0xff] }
  0xa8   : > { %3139 = vst [vmem:[#allocation24_spill] sm:$0xff] %v2615_v30  ;;  %v707_v46 = vadd.f32 %v691_v6, %v651_v15  ;;  %v798_v49 = vmul.f32 %v2503_v19, %v2615_v30  ;;  %v906_v63 = vmul.f32 %v2530_v33, %v2635_v53 }
  0xa9   : > { %1821 = vmatpush3.bf16.msra.mxu0 %v1993_v21  ;;  %1855 = vmatpush3.bf16.msra.mxu1 %v1993_v21  ;;  %v914_v25 = vadd.f32 %v898_v37, %v861_v9  ;;  %v915_v29 = vadd.f32 %v899_v41, %v862_v10  ;;  %v797_v21 = vmul.f32 %v2503_v19, %v2612_v23  ;;  %v2630_v37 = vld [vmem:[%s2463_s16 + $0x98] sm:$0xff] }
  0xaa   : > { %1822 = vmatprep.subr.bf16.mxu0 %v1994_v59  ;;  %1848 = vmatprep.subr.bf16.mxu1 %v1994_v59  ;;  %v708_v47 = vadd.f32 %v692_v11, %v652_v16  ;;  %v853_v41 = vmul.f32 %v2518_v28, %v2620_v35  ;;  %v854_v61 = vmul.f32 %v2518_v28, %v2630_v37  ;;  %v2657_v10 = vld [vmem:[%s2463_s16 + $0x9a] sm:$0xff] }
  0xab   : > { %v967_v54 = vadd.f32 %v951_v42, %v914_v25  ;;  %v968_v56 = vadd.f32 %v952_v43, %v915_v29  ;;  %v760_v3 = vadd.f32 %v744_v14, %v707_v46  ;;  %v907_v42 = vmul.f32 %v2530_v33, %v2640_v62  ;;  %v2652_v43 = vld [vmem:[%s2463_s16 + $0x92] sm:$0xff] }
  0xac   : > { %v761_v4 = vadd.f32 %v745_v22, %v708_v47  ;;  %v960_v14 = vmul.f32 %v2545_v40, %v2657_v10  ;;  %v592_v16 = vadd.f32 %v2557_v45, %v2506_v20  ;;  %v593_v29 = vadd.f32 %v2571_v52, %v2533_v34 }
  0xad   : > { %1823 = vmatpush3.bf16.msra.mxu0 %v1994_v59  ;;  %1856 = vmatpush3.bf16.msra.mxu1 %v1994_v59  ;;  %v990_v6 = vmul.f32 %v2625_v36, %v967_v54  ;;  %v991_v9 = vmul.f32 %v2625_v36, %v968_v56  ;;  %v959_v59 = vmul.f32 %v2545_v40, %v2652_v43 }
  0xae   : > { %1824 = vmatprep.subr.bf16.mxu0 %v1995_v24  ;;  %1849 = vmatprep.subr.bf16.mxu1 %v1995_v24  ;;  %v813_v11 = vadd.f32 %v797_v21, %v760_v3  ;;  %v814_v15 = vadd.f32 %v798_v49, %v761_v4  ;;  %v629_v46 = vmul.f32 %v2498_v17, %v2481_v2 }
  0xaf   : > { %v1013_v22 = vadd.f32 %v2647_v1, %v990_v6  ;;  %v1014_v25 = vadd.f32 %v2647_v1, %v991_v9  ;;  %v630_v49 = vmul.f32 %v2501_v18, %v2481_v2  ;;  %v685_v56 = vmul.f32 %v2513_v26, %v2487_v7 }
  0xb0   : > { %v869_v21 = vadd.f32 %v853_v41, %v813_v11  ;;  %v870_v47 = vadd.f32 %v854_v61, %v814_v15  ;;  %v645_v45 = vadd.f32 %v629_v46, %v592_v16  ;;  %v686_v17 = vmul.f32 %v2516_v27, %v2487_v7  ;;  %v2687_v11 = vld [vmem:[%s2463_s16 + $0x50] sm:$0xff] }
  0xb1   : > { %1825 = vmatpush3.bf16.msra.mxu0 %v1995_v24  ;;  %1857 = vmatpush3.bf16.msra.mxu1 %v1995_v24  ;;  %v1029_v54 = vmax.f32 %v1013_v22, 0.0  ;;  %v1030_v20 = vmax.f32 %v1014_v25, 0.0  ;;  %v646_v52 = vadd.f32 %v630_v49, %v593_v29  ;;  %v738_v18 = vmul.f32 %v2525_v31, %v2492_v13  ;;  %v2706_v49 = vld [vmem:[%s2463_s16 + $0x4a] sm:$0xff] }
  0xb2   : > { %v922_v3 = vadd.f32 %v906_v63, %v869_v21  ;;  %v923_v34 = vadd.f32 %v907_v42, %v870_v47  ;;  %v701_v41 = vadd.f32 %v685_v56, %v645_v45  ;;  %v739_v61 = vmul.f32 %v2528_v32, %v2492_v13  ;;  %v2684_v42 = vld [vmem:[%s2463_s16 + $0x48] sm:$0xff]  ;;  %v2701_v21 = vld [vmem:[%s2463_s16 + $0x51] sm:$0xff] }
  0xb3   : > { %v1045_v24 = vpack.c.bf16 %v1030_v20, %v1029_v54  ;;  %v702_v9 = vadd.f32 %v686_v17, %v646_v52  ;;  %v791_v63 = vmul.f32 %v2540_v38, %v2503_v19  ;;  %v792_v16 = vmul.f32 %v2543_v39, %v2503_v19  ;;  %v2709_v54 = vld [vmem:[%s2463_s16 + $0x52] sm:$0xff] }
  0xb4   : > { %v975_v4 = vadd.f32 %v959_v59, %v922_v3  ;;  %v976_v6 = vadd.f32 %v960_v14, %v923_v34  ;;  %v754_v15 = vadd.f32 %v738_v18, %v701_v41  ;;  %v847_v22 = vmul.f32 %v2518_v28, %v2684_v42  ;;  %v2696_v14 = vld [vmem:[%s2463_s16 + $0x49] sm:$0xff] }
  0xb5   : > { %1826 = vmatprep.mubr.bf16.mxu0 %v1045_v24  ;;  %v848_v59 = vmul.f32 %v2518_v28, %v2687_v11  ;;  %v755_v46 = vadd.f32 %v739_v61, %v702_v9  ;;  %v900_v47 = vmul.f32 %v2530_v33, %v2696_v14  ;;  %v901_v45 = vmul.f32 %v2530_v33, %v2701_v21 }
  0xb6   : > { %v998_v25 = vmul.f32 %v2625_v36, %v975_v4  ;;  %v999_v29 = vmul.f32 %v2625_v36, %v976_v6  ;;  %v807_v20 = vadd.f32 %v791_v63, %v754_v15  ;;  %v953_v56 = vmul.f32 %v2545_v40, %v2706_v49 }
  0xb7   : > { %v954_v3 = vmul.f32 %v2545_v40, %v2709_v54  ;;  %v808_v17 = vadd.f32 %v792_v16, %v755_v46  ;;  %v531_v24 = vmul.f32 %v2590_v0, %v2467_v55  ;;  %v532_v18 = vmul.f32 %v2595_v5, %v2467_v55 }
  0xb8   : > { %v1021_v34 = vadd.f32 %v2647_v1, %v998_v25  ;;  %v1022_v52 = vadd.f32 %v2647_v1, %v999_v29  ;;  %v863_v41 = vadd.f32 %v847_v22, %v807_v20  ;;  %v584_v61 = vmul.f32 %v2600_v8, %v2473_v60 }
  0xb9   : > { %v585_v4 = vmul.f32 %v2605_v12, %v2473_v60  ;;  %v864_v63 = vadd.f32 %v848_v59, %v808_v17  ;;  %v637_v15 = vmul.f32 %v2612_v23, %v2481_v2  ;;  %v638_v22 = vmul.f32 %v2615_v30, %v2481_v2 }
  0xba   : > { %v1037_v6 = vmax.f32 %v1021_v34, 0.0  ;;  %v1038_v9 = vmax.f32 %v1022_v52, 0.0  ;;  %v916_v16 = vadd.f32 %v900_v47, %v863_v41  ;;  %v600_v25 = vadd.f32 %v584_v61, %v531_v24  ;;  %v2744_v61 = vld [vmem:[%s2463_s16 + $0xa8] sm:$0xff] }
  0xbb   : > { %v601_v29 = vadd.f32 %v585_v4, %v532_v18  ;;  %v917_v20 = vadd.f32 %v901_v45, %v864_v63  ;;  %v693_v8 = vmul.f32 %v2620_v35, %v2487_v7  ;;  %v694_v34 = vmul.f32 %v2630_v37, %v2487_v7  ;;  %v2753_v63 = vld [vmem:[%s2463_s16 + $0xa9] sm:$0xff] }
  0xbc   : > { %v1049_v46 = vpack.c.bf16 %v1038_v9, %v1037_v6  ;;  %v969_v59 = vadd.f32 %v953_v56, %v916_v16  ;;  %v653_v52 = vadd.f32 %v637_v15, %v600_v25  ;;  %v746_v17 = vmul.f32 %v2635_v53, %v2492_v13  ;;  %v2748_v9 = vld [vmem:[%s2463_s16 + $0xb0] sm:$0xff] }
  0xbd   : > { %v654_v47 = vadd.f32 %v638_v22, %v601_v29  ;;  %v970_v24 = vadd.f32 %v954_v3, %v917_v20  ;;  %v747_v45 = vmul.f32 %v2640_v62, %v2492_v13  ;;  %v799_v41 = vmul.f32 %v2652_v43, %v2503_v19  ;;  %v2756_v15 = vld [vmem:[%s2463_s16 + $0xb1] sm:$0xff] }
  0xbe   : > { %1834 = vmatprep.mubr.bf16.mxu1 %v1049_v46  ;;  %v800_v18 = vmul.f32 %v2657_v10, %v2503_v19  ;;  %v992_v56 = vmul.f32 %v2625_v36, %v969_v59  ;;  %v709_v4 = vadd.f32 %v693_v8, %v653_v52  ;;  %v855_v3 = vmul.f32 %v2518_v28, %v2744_v61  ;;  %v2766_v22 = vld [vmem:[%s2463_s16 + $0xaa] sm:$0xff]  ;;  %v2770_v59 = vld [vmem:[%s2463_s16 + $0xb2] sm:$0xff] }
  0xbf   : > { %v710_v6 = vadd.f32 %v694_v34, %v654_v47  ;;  %v993_v16 = vmul.f32 %v2625_v36, %v970_v24  ;;  %v856_v25 = vmul.f32 %v2518_v28, %v2748_v9  ;;  %v908_v29 = vmul.f32 %v2530_v33, %v2753_v63  ;;  %3140 = vst [vmem:[#allocation25_spill] sm:$0xff] %v2770_v59 }
  0xc0   : > { %v909_v8 = vmul.f32 %v2530_v33, %v2756_v15  ;;  %v1015_v46 = vadd.f32 %v2647_v1, %v992_v56  ;;  %v762_v20 = vadd.f32 %v746_v17, %v709_v4  ;;  %v961_v52 = vmul.f32 %v2545_v40, %v2766_v22 }
  0xc1   : > { %v763_v34 = vadd.f32 %v747_v45, %v710_v6  ;;  %v1016_v47 = vadd.f32 %v2647_v1, %v993_v16  ;;  %v962_v24 = vmul.f32 %v2545_v40, %v2770_v59  ;;  %v525_v30 = vmul.f32 %v2513_v26, %v2467_v55 }
  0xc2   : > { %v526_v23 = vmul.f32 %v2516_v27, %v2467_v55  ;;  %v1031_v12 = vmax.f32 %v1015_v46, 0.0  ;;  %v815_v56 = vadd.f32 %v799_v41, %v762_v20  ;;  %v578_v45 = vmul.f32 %v2525_v31, %v2473_v60 }
  0xc3   : > { %v816_v17 = vadd.f32 %v800_v18, %v763_v34  ;;  %v1032_v4 = vmax.f32 %v1016_v47, 0.0  ;;  %v579_v6 = vmul.f32 %v2528_v32, %v2473_v60  ;;  %v631_v16 = vmul.f32 %v2540_v38, %v2481_v2 }
  0xc4   : > { %v632_v5 = vmul.f32 %v2543_v39, %v2481_v2  ;;  %v871_v26 = vadd.f32 %v855_v3, %v815_v56  ;;  %v594_v59 = vadd.f32 %v578_v45, %v525_v30  ;;  %v687_v27 = vmul.f32 %v2684_v42, %v2487_v7 }
  0xc5   : > { %v872_v0 = vadd.f32 %v856_v25, %v816_v17  ;;  %v1046_v41 = vpack.c.bf16 %v1032_v4, %v1031_v12  ;;  %v595_v18 = vadd.f32 %v579_v6, %v526_v23  ;;  %v688_v31 = vmul.f32 %v2687_v11, %v2487_v7 }
  0xc6   : > { %v740_v32 = vmul.f32 %v2696_v14, %v2492_v13  ;;  %v924_v46 = vadd.f32 %v908_v29, %v871_v26  ;;  %v647_v38 = vadd.f32 %v631_v16, %v594_v59  ;;  %v741_v39 = vmul.f32 %v2701_v21, %v2492_v13 }
  0xc7   : > { %v925_v20 = vadd.f32 %v909_v8, %v872_v0  ;;  %1827 = vmatmul.mubr.bf16.vlgmr.msra.gmra.mxu0 %v1046_v41  ;;  %v648_v3 = vadd.f32 %v632_v5, %v595_v18  ;;  %v793_v30 = vmul.f32 %v2706_v49, %v2503_v19  ;;  %v794_v12 = vmul.f32 %v2709_v54, %v2503_v19 }
  0xc8   : > { %v849_v23 = vmul.f32 %v2518_v28, %v2554_v44  ;;  %v977_v25 = vadd.f32 %v961_v52, %v924_v46  ;;  %v703_v47 = vadd.f32 %v687_v27, %v647_v38  ;;  %v850_v0 = vmul.f32 %v2518_v28, %v2560_v48 }
  0xc9   : > { %v978_v34 = vadd.f32 %v962_v24, %v925_v20  ;;  %v704_v29 = vadd.f32 %v688_v31, %v648_v3  ;;  %v902_v8 = vmul.f32 %v2530_v33, %v2565_v50  ;;  %v903_v5 = vmul.f32 %v2530_v33, %v2568_v51 }
  0xca   : > { %v955_v59 = vmul.f32 %v2545_v40, %v2582_v57  ;;  %v1000_v56 = vmul.f32 %v2625_v36, %v977_v25  ;;  %v756_v52 = vadd.f32 %v740_v32, %v703_v47  ;;  %v956_v24 = vmul.f32 %v2545_v40, %v2585_v58 }
  0xcb   : > { %v1001_v17 = vmul.f32 %v2625_v36, %v978_v34  ;;  %v757_v45 = vadd.f32 %v741_v39, %v704_v29  ;;  %v533_v4 = vmul.f32 %v2620_v35, %v2467_v55  ;;  %v534_v6 = vmul.f32 %v2630_v37, %v2467_v55  ;;  %v2840_v29 = vld [vmem:[%s2463_s16 + $0xc0] sm:$0xff] }
  0xcc   : > { %v586_v16 = vmul.f32 %v2635_v53, %v2473_v60  ;;  %v1023_v26 = vadd.f32 %v2647_v1, %v1000_v56  ;;  %v809_v41 = vadd.f32 %v793_v30, %v756_v52  ;;  %v587_v18 = vmul.f32 %v2640_v62, %v2473_v60 }
  0xcd   : > { %v1024_v27 = vadd.f32 %v2647_v1, %v1001_v17  ;;  %v810_v31 = vadd.f32 %v794_v12, %v757_v45  ;;  %v639_v46 = vmul.f32 %v2652_v43, %v2481_v2  ;;  %v640_v35 = vmul.f32 %v2657_v10, %v2481_v2  ;;  %v3141_v17 = vld [vmem:[#allocation25_spill] sm:$0xff]  ;;  %v2845_v45 = vld [vmem:[%s2463_s16 + $0xc8] sm:$0xff] }
  0xce   : > { %v602_v32 = vadd.f32 %v586_v16, %v533_v4  ;;  %v1039_v37 = vmax.f32 %v1023_v26, 0.0  ;;  %v865_v53 = vadd.f32 %v849_v23, %v809_v41  ;;  %v603_v38 = vadd.f32 %v587_v18, %v534_v6  ;;  %v2850_v4 = vld [vmem:[%s2463_s16 + $0xc1] sm:$0xff] }
  0xcf   : > { %v1040_v20 = vmax.f32 %v1024_v27, 0.0  ;;  %v866_v39 = vadd.f32 %v850_v0, %v810_v31  ;;  %v695_v30 = vmul.f32 %v2744_v61, %v2487_v7  ;;  %v696_v62 = vmul.f32 %v2748_v9, %v2487_v7  ;;  %v2855_v27 = vld [vmem:[%s2463_s16 + $0xc9] sm:$0xff] }
  0xd0   : > { %v655_v3 = vadd.f32 %v639_v46, %v602_v32  ;;  %v918_v43 = vadd.f32 %v902_v8, %v865_v53  ;;  %v656_v25 = vadd.f32 %v640_v35, %v603_v38  ;;  %v748_v10 = vmul.f32 %v2753_v63, %v2492_v13  ;;  %v2860_v41 = vld [vmem:[%s2463_s16 + $0xc2] sm:$0xff]  ;;  %v2866_v46 = vld [vmem:[%s2463_s16 + $0xca] sm:$0xff] }
  0xd1   : > { %v1050_v12 = vpack.c.bf16 %v1040_v20, %v1039_v37  ;;  %v919_v34 = vadd.f32 %v903_v5, %v866_v39  ;;  %v749_v47 = vmul.f32 %v2756_v15, %v2492_v13  ;;  %v801_v0 = vmul.f32 %v2766_v22, %v2503_v19 }
  0xd2   : > { %v711_v23 = vadd.f32 %v695_v30, %v655_v3  ;;  %v971_v56 = vadd.f32 %v955_v59, %v918_v43  ;;  %v712_v8 = vadd.f32 %v696_v62, %v656_v25  ;;  %v802_v52 = vmul.f32 %v3141_v17, %v2503_v19 }
  0xd3   : > { %1835 = vmatmul.mubr.bf16.vlgmr.msra.gmra.mxu1 %v1050_v12  ;;  %v857_v5 = vmul.f32 %v2518_v28, %v2840_v29  ;;  %v972_v6 = vadd.f32 %v956_v24, %v919_v34  ;;  %v858_v26 = vmul.f32 %v2518_v28, %v2845_v45  ;;  %v910_v59 = vmul.f32 %v2530_v33, %v2850_v4 }
  0xd4   : > { %v764_v16 = vadd.f32 %v748_v10, %v711_v23  ;;  %v994_v18 = vmul.f32 %v2625_v36, %v971_v56  ;;  %v765_v31 = vadd.f32 %v749_v47, %v712_v8  ;;  %v911_v32 = vmul.f32 %v2530_v33, %v2855_v27 }
  0xd5   : > { %v963_v24 = vmul.f32 %v2545_v40, %v2860_v41  ;;  %v995_v35 = vmul.f32 %v2625_v36, %v972_v6  ;;  %v964_v20 = vmul.f32 %v2545_v40, %v2866_v46  ;;  %v527_v53 = vmul.f32 %v2684_v42, %v2467_v55 }
  0xd6   : > { %v817_v37 = vadd.f32 %v801_v0, %v764_v16  ;;  %v1017_v38 = vadd.f32 %v2647_v1, %v994_v18  ;;  %v818_v39 = vadd.f32 %v802_v52, %v765_v31  ;;  %v528_v3 = vmul.f32 %v2687_v11, %v2467_v55  ;;  %v3142_v31 = vld [vmem:[#allocation19_spill] sm:$0xff] }
  0xd7   : > { %v580_v30 = vmul.f32 %v2696_v14, %v2473_v60  ;;  %v1018_v62 = vadd.f32 %v2647_v1, %v995_v35  ;;  %v581_v43 = vmul.f32 %v2701_v21, %v2473_v60  ;;  %v633_v25 = vmul.f32 %v2706_v49, %v2481_v2 }
  0xd8   : > { %v873_v12 = vadd.f32 %v857_v5, %v817_v37  ;;  %v1033_v10 = vmax.f32 %v1017_v38, 0.0  ;;  %v874_v42 = vadd.f32 %v858_v26, %v818_v39  ;;  %v634_v23 = vmul.f32 %v2709_v54, %v2481_v2  ;;  %v3144_v37 = vld [vmem:[#allocation21_spill] sm:$0xff]  ;;  %v3146_v39 = vld [vmem:[#allocation23_spill] sm:$0xff] }
  0xd9   : > { %v596_v34 = vadd.f32 %v580_v30, %v527_v53  ;;  %v1034_v47 = vmax.f32 %v1018_v62, 0.0  ;;  %v597_v0 = vadd.f32 %v581_v43, %v528_v3  ;;  %v689_v14 = vmul.f32 %v2487_v7, %v2554_v44  ;;  %v3147_v30 = vld [vmem:[#allocation24_spill] sm:$0xff] }
  0xda   : > { %v926_v11 = vadd.f32 %v910_v59, %v873_v12  ;;  %v927_v56 = vadd.f32 %v911_v32, %v874_v42  ;;  %v690_v21 = vmul.f32 %v2487_v7, %v2560_v48  ;;  %v742_v49 = vmul.f32 %v2492_v13, %v2565_v50  ;;  %v3143_v32 = vld [vmem:[#allocation20_spill] sm:$0xff] }
  0xdb   : > { %v649_v8 = vadd.f32 %v633_v25, %v596_v34  ;;  %v1047_v52 = vpack.c.bf16 %v1034_v47, %v1033_v10  ;;  %v650_v6 = vadd.f32 %v634_v23, %v597_v0  ;;  %v743_v54 = vmul.f32 %v2492_v13, %v2568_v51 }
  0xdc   : > { %v979_v5 = vadd.f32 %v963_v24, %v926_v11  ;;  %v980_v16 = vadd.f32 %v964_v20, %v927_v56  ;;  %v795_v59 = vmul.f32 %v2503_v19, %v2582_v57  ;;  %v796_v44 = vmul.f32 %v2503_v19, %v2585_v58  ;;  %v3145_v57 = vld [vmem:[#allocation22_spill] sm:$0xff] }
  0xdd   : > { %v705_v26 = vadd.f32 %v689_v14, %v649_v8  ;;  %1830 = vmatprep.mubr.bf16.mxu0 %v1047_v52  ;;  %v706_v18 = vadd.f32 %v690_v21, %v650_v6  ;;  %v851_v50 = vmul.f32 %v2518_v28, %v3142_v31  ;;  %v852_v24 = vmul.f32 %v2518_v28, %v3143_v32  ;;  %v1578_v52 = vld [vmem:[%s2463_s16 + $0xd8] sm:$0xff]  ;;  %v1579_v6 = vld [vmem:[%s2463_s16 + $0xe0] sm:$0xff] }
  0xde   : > { %v1002_v48 = vmul.f32 %v2625_v36, %v979_v5  ;;  %v1003_v51 = vmul.f32 %v2625_v36, %v980_v16  ;;  %v904_v20 = vmul.f32 %v2530_v33, %v3144_v37  ;;  %v905_v53 = vmul.f32 %v2530_v33, %v3145_v57  ;;  %v1595_v16 = vld [vmem:[%s2463_s16 + $0xd9] sm:$0xff]  ;;  %v1613_v32 = vld [vmem:[%s2463_s16 + $0xe2] sm:$0xff] }
  0xdf   : > { %v758_v35 = vadd.f32 %v742_v49, %v705_v26  ;;  %v759_v38 = vadd.f32 %v743_v54, %v706_v18  ;;  %v957_v3 = vmul.f32 %v2545_v40, %v3146_v39  ;;  %v958_v62 = vmul.f32 %v2545_v40, %v3147_v30  ;;  %v1612_v18 = vld [vmem:[%s2463_s16 + $0xda] sm:$0xff] }
  0xe0   : > { %v1025_v58 = vadd.f32 %v2647_v1, %v1002_v48  ;;  %v1026_v12 = vadd.f32 %v2647_v1, %v1003_v51  ;;  %v535_v25 = vmul.f32 %v2744_v61, %v2467_v55  ;;  %v536_v10 = vmul.f32 %v2748_v9, %v2467_v55 }
  0xe1   : > { %v811_v43 = vadd.f32 %v795_v59, %v758_v35  ;;  %v812_v34 = vadd.f32 %v796_v44, %v759_v38  ;;  %v588_v23 = vmul.f32 %v2753_v63, %v2473_v60  ;;  %v589_v47 = vmul.f32 %v2756_v15, %v2473_v60 }
  0xe2   : > { %v1041_v42 = vmax.f32 %v1025_v58, 0.0  ;;  %v1042_v11 = vmax.f32 %v1026_v12, 0.0  ;;  %v641_v14 = vmul.f32 %v2766_v22, %v2481_v2  ;;  %v642_v61 = vmul.f32 %v3141_v17, %v2481_v2 }
  0xe3   : > { %v867_v0 = vadd.f32 %v851_v50, %v811_v43  ;;  %v868_v56 = vadd.f32 %v852_v24, %v812_v34  ;;  %v604_v55 = vadd.f32 %v588_v23, %v535_v25  ;;  %v605_v9 = vadd.f32 %v589_v47, %v536_v10 }
  0xe4   : > { %v697_v8 = vmul.f32 %v2840_v29, %v2487_v7  ;;  %v1051_v63 = vpack.c.bf16 %v1042_v11, %v1041_v42  ;;  %v698_v60 = vmul.f32 %v2845_v45, %v2487_v7  ;;  %v750_v15 = vmul.f32 %v2850_v4, %v2492_v13 }
  0xe5   : > { %v920_v21 = vadd.f32 %v904_v20, %v867_v0  ;;  %v921_v22 = vadd.f32 %v905_v53, %v868_v56  ;;  %v657_v49 = vadd.f32 %v641_v14, %v604_v55  ;;  %v658_v2 = vadd.f32 %v642_v61, %v605_v9 }
  0xe6   : > { %v751_v17 = vmul.f32 %v2855_v27, %v2492_v13  ;;  %1838 = vmatprep.mubr.bf16.mxu1 %v1051_v63  ;;  %v803_v5 = vmul.f32 %v2860_v41, %v2503_v19  ;;  %v804_v4 = vmul.f32 %v2866_v46, %v2503_v19  ;;  %v859_v13 = vmul.f32 %v2518_v28, %v1578_v52  ;;  %v1596_v27 = vld [vmem:[%s2463_s16 + $0xe1] sm:$0xff]  ;;  %s1373_s16 = sshll.u32 %s2431_s7, 4  ;;  %s3015_s16 = int_to_ptr.vmem [resolvable:$true] %s1373_s16 }
  0xe7   : > { %v973_v29 = vadd.f32 %v957_v3, %v920_v21  ;;  %v974_v7 = vadd.f32 %v958_v62, %v921_v22  ;;  %v713_v45 = vadd.f32 %v697_v8, %v657_v49  ;;  %v714_v54 = vadd.f32 %v698_v60, %v658_v2  ;;  %s2076_s15 = scalar_lea.vmem %s3015_s16, 1024 }
  0xe8   : > { %v860_v41 = vmul.f32 %v2518_v28, %v1579_v6  ;;  %v912_v50 = vmul.f32 %v2530_v33, %v1595_v16  ;;  %v913_v51 = vmul.f32 %v2530_v33, %v1596_v27  ;;  %v965_v37 = vmul.f32 %v2545_v40, %v1612_v18  ;;  %p2077_p3 = scmp.ne.s32.totalorder %s3015_s16, %s2076_s15 }
  0xe9   : > { %v996_v26 = vmul.f32 %v2625_v36, %v973_v29  ;;  %v997_v59 = vmul.f32 %v2625_v36, %v974_v7  ;;  %v766_v44 = vadd.f32 %v750_v15, %v713_v45  ;;  %v767_v48 = vadd.f32 %v751_v17, %v714_v54 }
  0xea   : > { %v966_v28 = vmul.f32 %v2545_v40, %v1613_v32  ;;  %v2962_v40 = vld [vmem:[%s3148_s12] ss:$0 sm:$0xff]  ;;  %p2078_p12 = pnand %p2077_p3, %p3153_p10  ;;  %s2210_s12 = smov [#allocation9]  }
  0xeb   : > { %v1019_v31 = vadd.f32 %v2647_v1, %v996_v26  ;;  %v1020_v19 = vadd.f32 %v2647_v1, %v997_v59  ;;  %v819_v46 = vadd.f32 %v803_v5, %v766_v44  ;;  %v820_v24 = vadd.f32 %v804_v4, %v767_v48  ;;  %s2080_s8 = sshll.u32 %s2210_s12, 4  ;;  %s2081_s8 = int_to_ptr.vmem [resolvable:$false] %s2080_s8 }
  0xec   : > { %p2079_p2 = pneg %p2078_p12  ;;  %s2082_s13 = scalar_lea.vmem %s2081_s8, 2048 }
  0xed   : > { %v1035_v35 = vmax.f32 %v1019_v31, 0.0  ;;  %v1036_v20 = vmax.f32 %v1020_v19, 0.0  ;;  %v875_v57 = vadd.f32 %v859_v13, %v819_v46  ;;  %v876_v53 = vadd.f32 %v860_v41, %v820_v24  ;;  %p2083_p4 = scmp.lt.s32.totalorder %s3015_s16, %s2081_s8  ;;  %p2084_p6 = scmp.lt.s32.totalorder %s2082_s13, %s2076_s15 }
  0xef   : > { %v1048_v58 = vpack.c.bf16 %v1036_v20, %v1035_v35  ;;  %v928_v38 = vadd.f32 %v912_v50, %v875_v57  ;;  %v929_v39 = vadd.f32 %v913_v51, %v876_v53  ;;  %p2085_p5 = por %p2084_p6, %p2083_p4 }
  0xf1   : > { %1831 = vmatmul.mubr.bf16.gmra.mxu0 %v1048_v58  ;;  %v981_v3 = vadd.f32 %v965_v37, %v928_v38  ;;  %v982_v30 = vadd.f32 %v966_v28, %v929_v39  ;;  %p2086_p1 = pnand %p2085_p5, %p2079_p2 }
  0xf3   : > { %v1004_v62 = vmul.f32 %v2625_v36, %v981_v3  ;;  %v1005_v12 = vmul.f32 %v2625_v36, %v982_v30  ;;  %v2968_v36 = vld [vmem:[%s3149_s23] ss:$0 sm:$0xff] }
  0xf5   : > { %v1027_v33 = vadd.f32 %v2647_v1, %v1004_v62  ;;  %v1028_v43 = vadd.f32 %v2647_v1, %v1005_v12 }
  0xf7   : > { %v1043_v25 = vmax.f32 %v1027_v33, 0.0  ;;  %v1044_v10 = vmax.f32 %v1028_v43, 0.0 }
  0xf9   : > { %v1052_v42 = vpack.c.bf16 %v1044_v10, %v1043_v25 }
  0xfb   : > { %1839 = vmatmul.mubr.bf16.gmra.mxu1 %v1052_v42 }
 0x187   : > { %v1828_v34 = vpop.f32.mrf.mxu0 }
 0x188   : > { %v1223_v23 = vmul.f32 %v1828_v34, %v2962_v40 }
 0x189   : > { %v1151_v47 = vpop.f32.mrf.mxu0 }
 0x18a   : > { %v1221_v1 = vmul.f32 %v2962_v40, %v1151_v47  ;;  %v1246_v0 = vadd.f32 %v2968_v36, %v1223_v23 }
 0x18b   : > { %v1829_v11 = vpop.f32.mrf.mxu0 }
 0x18c   : > { %v1224_v14 = vmul.f32 %v1829_v11, %v2962_v40  ;;  %v1244_v56 = vadd.f32 %v2968_v36, %v1221_v1  ;;  %v1262_v8 = vmax.f32 %v1246_v0, 0.0 }
 0x18d   : > { %v1154_v61 = vpop.f32.mrf.mxu0 }
 0x18e   : > { %v1247_v55 = vadd.f32 %v2968_v36, %v1224_v14  ;;  %v1222_v9 = vmul.f32 %v2962_v40, %v1154_v61  ;;  %v1260_v15 = vmax.f32 %v1244_v56, 0.0 }
 0x190   : > { %v1263_v63 = vmax.f32 %v1247_v55, 0.0  ;;  %v1245_v21 = vadd.f32 %v2968_v36, %v1222_v9 }
 0x192   : > { %v1740_v22 = vpack.c.bf16 %v1263_v63, %v1262_v8  ;;  %v1261_v49 = vmax.f32 %v1245_v21, 0.0 }
 0x193   : > { %v1836_v60 = vpop.f32.mrf.mxu1 }
 0x194   : > { %v1231_v2 = vmul.f32 %v1836_v60, %v2962_v40  ;;  %1787 = vst [vmem:[%s2431_s7 + $0x8] sm:$0xff] %v1740_v22   ;;  %v1735_v52 = vpack.c.bf16 %v1261_v49, %v1260_v15 }
 0x195   : > { %v1183_v17 = vpop.f32.mrf.mxu1 }
 0x196   : > { %v1229_v29 = vmul.f32 %v2962_v40, %v1183_v17  ;;  %1736 = vst [vmem:[%s2431_s7] sm:$0xff] %v1735_v52   ;;  %v1254_v6 = vadd.f32 %v2968_v36, %v1231_v2 }
 0x197   : > { %v1837_v5 = vpop.f32.mrf.mxu1 }
 0x198   : > { %v1232_v7 = vmul.f32 %v1837_v5, %v2962_v40  ;;  %v1252_v54 = vadd.f32 %v2968_v36, %v1229_v29  ;;  %v1270_v26 = vmax.f32 %v1254_v6, 0.0 }
 0x199   : > { %v1186_v45 = vpop.f32.mrf.mxu1 }
 0x19a   : > { %v1255_v4 = vadd.f32 %v2968_v36, %v1232_v7  ;;  %v1230_v16 = vmul.f32 %v2962_v40, %v1186_v45  ;;  %v1268_v59 = vmax.f32 %v1252_v54, 0.0 }
 0x19c   : > { %v1271_v13 = vmax.f32 %v1255_v4, 0.0  ;;  %v1253_v27 = vadd.f32 %v2968_v36, %v1230_v16 }
 0x19e   : > { %v1760_v44 = vpack.c.bf16 %v1271_v13, %v1270_v26  ;;  %v1269_v48 = vmax.f32 %v1253_v27, 0.0 }
 0x1a0   : > { %1791 = vst [vmem:[%s2431_s7 + $0x28] sm:$0xff] %v1760_v44   ;;  %v1755_v41 = vpack.c.bf16 %v1269_v48, %v1268_v59 }
 0x1a2   : > { %1790 = vst [vmem:[%s2431_s7 + $0x20] sm:$0xff] %v1755_v41  }
 0x1b1   : > { %v1832_v18 = vpop.f32.mrf.mxu0 }
 0x1b2   : > { %v1227_v31 = vmul.f32 %v1832_v18, %v2962_v40 }
 0x1b3   : > { %v1167_v50 = vpop.f32.mrf.mxu0 }
 0x1b4   : > { %v1225_v32 = vmul.f32 %v2962_v40, %v1167_v50  ;;  %v1250_v46 = vadd.f32 %v2968_v36, %v1227_v31 }
 0x1b5   : > { %v1833_v19 = vpop.f32.mrf.mxu0 }
 0x1b6   : > { %v1228_v24 = vmul.f32 %v1833_v19, %v2962_v40  ;;  %v1248_v35 = vadd.f32 %v2968_v36, %v1225_v32  ;;  %v1266_v57 = vmax.f32 %v1250_v46, 0.0 }
 0x1b7   : > { %v1170_v51 = vpop.f32.mrf.mxu0 }
 0x1b8   : > { %v1251_v37 = vadd.f32 %v2968_v36, %v1228_v24  ;;  %v1226_v20 = vmul.f32 %v2962_v40, %v1170_v51  ;;  %v1264_v39 = vmax.f32 %v1248_v35, 0.0 }
 0x1ba   : > { %v1267_v53 = vmax.f32 %v1251_v37, 0.0  ;;  %v1249_v28 = vadd.f32 %v2968_v36, %v1226_v20 }
 0x1bb   : > { %v1840_v58 = vpop.f32.mrf.mxu1 }
 0x1bc   : > { %v1235_v38 = vmul.f32 %v1840_v58, %v2962_v40  ;;  %v1750_v3 = vpack.c.bf16 %v1267_v53, %v1266_v57  ;;  %v1265_v30 = vmax.f32 %v1249_v28, 0.0 }
 0x1bd   : > { %v1199_v62 = vpop.f32.mrf.mxu1 }
 0x1be   : > { %v1233_v12 = vmul.f32 %v2962_v40, %v1199_v62  ;;  %1789 = vst [vmem:[%s2431_s7 + $0x18] sm:$0xff] %v1750_v3   ;;  %v1745_v33 = vpack.c.bf16 %v1265_v30, %v1264_v39  ;;  %v1258_v25 = vadd.f32 %v2968_v36, %v1235_v38 }
 0x1bf   : > { %v1841_v43 = vpop.f32.mrf.mxu1 }
 0x1c0   : > { %v1236_v10 = vmul.f32 %v1841_v43, %v2962_v40  ;;  %1788 = vst [vmem:[%s2431_s7 + $0x10] sm:$0xff] %v1745_v33   ;;  %v1256_v34 = vadd.f32 %v2968_v36, %v1233_v12  ;;  %v1274_v1 = vmax.f32 %v1258_v25, 0.0 }
 0x1c1   : > { %v1202_v42 = vpop.f32.mrf.mxu1 }
 0x1c2   : > { %v1259_v23 = vadd.f32 %v2968_v36, %v1236_v10  ;;  %v1234_v47 = vmul.f32 %v2962_v40, %v1202_v42  ;;  %v1272_v14 = vmax.f32 %v1256_v34, 0.0 }
 0x1c4   : > { %v1275_v11 = vmax.f32 %v1259_v23, 0.0  ;;  %v1257_v0 = vadd.f32 %v2968_v36, %v1234_v47 }
 0x1c6   : > { %v1770_v61 = vpack.c.bf16 %v1275_v11, %v1274_v1  ;;  %v1273_v56 = vmax.f32 %v1257_v0, 0.0 }
 0x1c8   : > { %1793 = vst [vmem:[%s2431_s7 + $0x38] sm:$0xff] %v1770_v61   ;;  %v1765_v40 = vpack.c.bf16 %v1273_v56, %v1272_v14 }
 0x1ca   : > { %1792 = vst [vmem:[%s2431_s7 + $0x30] sm:$0xff] %v1765_v40  }
 0x1cb   : > { %2089 = shalt.err (!%p2086_p1)
}
 0x1cc   : > { %s2090_s5 = scalar_lea.hbm %s3013_s4, 1024  ;;  %s2094_s22 = scalar_lea.hbm %s3152_s1, 4096 }
 0x1cd   : > { %p2091_p7 = scmp.ne.s32.totalorder %s3013_s4, %s2090_s5  ;;  %p2095_p0 = scmp.lt.s32.totalorder %s3013_s4, %s3152_s1 }
 0x1ce   : > { %p2096_p8 = scmp.lt.s32.totalorder %s2094_s22, %s2090_s5 }
 0x1cf   : > { %p2092_p9 = pnand %p2091_p7, %p3153_p10 }
 0x1d0   : > { %p2097_p11 = por %p2096_p8, %p2095_p0 }
 0x1d1   : > { %p2093_p13 = pneg %p2092_p9 }
 0x1d3   : > { %p2098_p3 = pnand %p2097_p11, %p2093_p13 }
 0x1d5   : > { %2101 = shalt.err (!%p2098_p3)
}
 0x1d6   : > { %s2211_s6 = smov 64   ;;  %s2212_s14 = smov 4  }
 0x1d7   : > { %1868 = dma.vmem_to_hbm [thread:$0]  (%p3153_p10), %s3015_s16, 1024, %s3013_s4, %s3021_s24, %s2211_s6, %s2211_s6, %s2212_s14  }
 0x1d8 PF: > { %s3154_s19 = sld [smem:[#allocation13_spill]]  ;;  %p1890_p12 = scmp.ge.s32.totalorder %s2200_s11, 2 }
 0x1d9   : > { %s3155_s21 = sld [smem:[#allocation17_spill]] }
 0x1de   : > { %s1388_s15 = sand.u32 1, %s3154_s19  }
 0x1df   : > { %p3156_p2 = scmp.ne.s32.totalorder %s3155_s21, 0  ;;  %s1389_s12 = scalar_lea.sflag [#allocation5], %s1388_s15 }
 0x1e1   : > { %p1882_p4 = pnand %p1890_p12, %p3156_p2 }
 0x1e3   : > { %p1883_p6 = pneg %p1882_p4 }
 0x1e5   : > { %2155 = dma.done.wait (%p1883_p6), %s1389_s12, 1024  }
 0x1e6   : > { %2157 = vsyncadd (%p1883_p6), %s1389_s12, 4294966272  ;;  %s24_s11 = sadd.s32 1, %s2200_s11   ;;  %s3157_s30 = sld [smem:[#allocation15_spill]] }
 0x1e7   : > { %p21_p5 = scmp.ge.s32.totalorder %s24_s11, 6   ;;  %s3158_s16 = sld [smem:[#allocation18_spill]] }
 0x1e8   : > { %s3159_s24 = smov %s2164_s25  ;;  %s3160_s25 = smov %s2168_s26 }
 0x1e9   : > { %s3161_s26 = smov %s2398_s9  ;;  %s3162_s27 = smov %s2176_s28 }
 0x1ea   : > { %s3163_s28 = smov %s2180_s29  ;;  %s3164_s29 = smov %s2393_s17 }
 0x1eb   : > { %s3165_s8 = smov %s2196_s10  ;;  %s3167_s10 = smov %s3173_s20 }
 0x1ec   :  { %23 = sbr.rel (!%p21_p5) target bundleno = 16 (0x10), region = 109 }
 0x1ed   : > { %s3166_s9 = smov %s3158_s16 }
 0x1f1   :  { %1394 = vsyncpa [#allocation4], 1 }
 0x1f2   :  { %1396 = vsyncpa [#allocation4 + $0x1], 1 }
 0x1f3   :  { %1397 = vsyncpa [#allocation7], 1 }
 0x1f4   :  { %1398 = vsyncpa [#allocation5], 1 }
 0x1f5   :  { %1400 = vsyncpa [#allocation5 + $0x1], 1 }

</bundles_post_ra>
